<compile_context>
chip_gen: v6e
topology: v6e:2x2x1
jax: 0.10.0
libtpu: 0.0.40
codegen_flags: <defaults>
</compile_context>

<pallas_src>
import functools
import math

import jax
import jax.numpy as jnp
from jax import lax
from jax.experimental import pallas as pl
from jax.experimental.pallas import tpu as pltpu


_PARALLEL = pltpu.CompilerParams(dimension_semantics=("parallel",))
_LN_EPS = 1e-5  # PyTorch nn.LayerNorm default


# ---------------------------------------------------------------------------
# In-kernel helpers (traced inside Pallas bodies)
# ---------------------------------------------------------------------------
def _mish(y):
    """mish(y) = y * tanh(softplus(y)) via the rational rewrite (2 EUP ops)."""
    e = jnp.exp(jnp.minimum(y, 20.0))
    num = e * (e + 2.0)
    m = y * num * pl.reciprocal(num + 2.0)
    return jnp.where(y > 20.0, y, m)


def _layernorm(y, g, b, eps):
    mu = jnp.mean(y, axis=-1, keepdims=True)
    c = y - mu
    var = jnp.mean(c * c, axis=-1, keepdims=True)
    return c * lax.rsqrt(var + eps) * g + b


# ---------------------------------------------------------------------------
# Kernel bodies
# ---------------------------------------------------------------------------
def _dense_kernel(x_ref, w_ref, b_ref, o_ref):
    """o = x @ w + b  (used once, for the fused QKV projection)."""
    y = jnp.dot(x_ref[...], w_ref[...], preferred_element_type=jnp.float32)
    o_ref[...] = (y + b_ref[...]).astype(o_ref.dtype)


def _attn_entmax15_kernel(q_ref, k_ref, v_ref, o_ref, *, scale, n_iter):
    """Block of (batch*head) slices: entmax15(q k^T / sqrt(dh)) @ v."""
    q = q_ref[...]  # (bhb, S, Dh)
    k = k_ref[...]  # (bhb, S, Dh)
    v = v_ref[...]  # (bhb, S, Dh)

    s = jnp.einsum("bqd,bkd->bqk", q, k,
                   preferred_element_type=jnp.float32) * scale      # (bhb,S,S)

    # entmax15 along the last axis: p_i = ((s_i - max)/2 - tau)_+^2 with tau
    # such that sum_i p_i == 1.  After the shift tau lies in [-1, 0]; f(tau)
    # is monotone, so solve by bisection instead of an in-kernel sort.
    x = (s - jnp.max(s, axis=-1, keepdims=True)) * 0.5
    lo = jnp.full(x.shape[:-1] + (1,), -1.0, dtype=jnp.float32)
    hi = jnp.zeros_like(lo)

    def body(_, carry):
        lo_c, hi_c = carry
        mid = 0.5 * (lo_c + hi_c)
        f = jnp.sum(jnp.square(jnp.maximum(x - mid, 0.0)), axis=-1,
                    keepdims=True)
        ge = f >= 1.0
        return jnp.where(ge, mid, lo_c), jnp.where(ge, hi_c, mid)

    lo, hi = lax.fori_loop(0, n_iter, body, (lo, hi))
    tau = 0.5 * (lo + hi)
    p = jnp.square(jnp.maximum(x - tau, 0.0))                       # (bhb,S,S)

    out = jnp.einsum("bqk,bkd->bqd", p, v,
                     preferred_element_type=jnp.float32)
    o_ref[...] = out.astype(o_ref.dtype)


def _proj_residual_ln_kernel(ctx_ref, wo_ref, bo_ref, x_ref, g_ref, b_ref,
                             o_ref, *, eps):
    """o = x + LayerNorm(ctx @ wo + bo)   (attention output path, fused)."""
    y = jnp.dot(ctx_ref[...], wo_ref[...],
                preferred_element_type=jnp.float32) + bo_ref[...]
    ln = _layernorm(y, g_ref[...], b_ref[...], eps)
    o_ref[...] = (x_ref[...].astype(jnp.float32) + ln).astype(o_ref.dtype)


def _ffn_residual_ln_kernel(x_ref, wu_ref, bu_ref, wd_ref, bd_ref,
                            g2_ref, b2_ref, g3_ref, b3_ref, o_ref, *, eps):
    """o = LN3( x + LN2( mish(x @ Wu + bu) @ Wd + bd ) )   (fully fused)."""
    x = x_ref[...].astype(jnp.float32)
    h = jnp.dot(x, wu_ref[...], preferred_element_type=jnp.float32)
    h = _mish(h + bu_ref[...])
    y = jnp.dot(h, wd_ref[...], preferred_element_type=jnp.float32)
    y = y + bd_ref[...]
    x2 = x + _layernorm(y, g2_ref[...], b2_ref[...], eps)
    o_ref[...] = _layernorm(x2, g3_ref[...], b3_ref[...], eps
                            ).astype(o_ref.dtype)


# ---------------------------------------------------------------------------
# Pallas wrappers
# ---------------------------------------------------------------------------
def _row_block(m, block_rows):
    return m if m <= block_rows else block_rows


def _dense(x2d, w, b, *, block_rows=256):
    m, k = x2d.shape
    n = w.shape[1]
    bm = _row_block(m, block_rows)
    return pl.pallas_call(
        _dense_kernel,
        out_shape=jax.ShapeDtypeStruct((m, n), x2d.dtype),
        grid=(pl.cdiv(m, bm),),
        in_specs=[
            pl.BlockSpec((bm, k), lambda i: (i, 0)),
            pl.BlockSpec((k, n), lambda i: (0, 0)),
            pl.BlockSpec((1, n), lambda i: (0, 0)),
        ],
        out_specs=pl.BlockSpec((bm, n), lambda i: (i, 0)),
        compiler_params=_PARALLEL,
    )(x2d, w, b.reshape(1, n))


def _attention_entmax15(qh, kh, vh, *, block_bh=8, n_iter=30):
    # qh, kh, vh: (B*H, S, Dh)
    bh, s, dh = qh.shape
    bhb = min(bh, block_bh)
    scale = 1.0 / math.sqrt(dh)
    return pl.pallas_call(
        functools.partial(_attn_entmax15_kernel, scale=scale, n_iter=n_iter),
        out_shape=jax.ShapeDtypeStruct((bh, s, dh), qh.dtype),
        grid=(pl.cdiv(bh, bhb),),
        in_specs=[
            pl.BlockSpec((bhb, s, dh), lambda i: (i, 0, 0)),
            pl.BlockSpec((bhb, s, dh), lambda i: (i, 0, 0)),
            pl.BlockSpec((bhb, s, dh), lambda i: (i, 0, 0)),
        ],
        out_specs=pl.BlockSpec((bhb, s, dh), lambda i: (i, 0, 0)),
        compiler_params=_PARALLEL,
    )(qh, kh, vh)


def _proj_residual_ln(ctx2d, wo, bo, x2d, g, b, *, block_rows=256):
    m, d = x2d.shape
    bm = _row_block(m, block_rows)
    return pl.pallas_call(
        functools.partial(_proj_residual_ln_kernel, eps=_LN_EPS),
        out_shape=jax.ShapeDtypeStruct((m, d), x2d.dtype),
        grid=(pl.cdiv(m, bm),),
        in_specs=[
            pl.BlockSpec((bm, d), lambda i: (i, 0)),
            pl.BlockSpec((d, d), lambda i: (0, 0)),
            pl.BlockSpec((1, d), lambda i: (0, 0)),
            pl.BlockSpec((bm, d), lambda i: (i, 0)),
            pl.BlockSpec((1, d), lambda i: (0, 0)),
            pl.BlockSpec((1, d), lambda i: (0, 0)),
        ],
        out_specs=pl.BlockSpec((bm, d), lambda i: (i, 0)),
        compiler_params=_PARALLEL,
    )(ctx2d, wo, bo.reshape(1, d), x2d, g.reshape(1, d), b.reshape(1, d))


def _ffn_residual_ln(x2d, wu, bu, wd, bd, g2, b2, g3, b3, *, block_rows=256):
    m, d = x2d.shape
    h = wu.shape[1]
    bm = _row_block(m, block_rows)
    return pl.pallas_call(
        functools.partial(_ffn_residual_ln_kernel, eps=_LN_EPS),
        out_shape=jax.ShapeDtypeStruct((m, d), x2d.dtype),
        grid=(pl.cdiv(m, bm),),
        in_specs=[
            pl.BlockSpec((bm, d), lambda i: (i, 0)),
            pl.BlockSpec((d, h), lambda i: (0, 0)),
            pl.BlockSpec((1, h), lambda i: (0, 0)),
            pl.BlockSpec((h, d), lambda i: (0, 0)),
            pl.BlockSpec((1, d), lambda i: (0, 0)),
            pl.BlockSpec((1, d), lambda i: (0, 0)),
            pl.BlockSpec((1, d), lambda i: (0, 0)),
            pl.BlockSpec((1, d), lambda i: (0, 0)),
            pl.BlockSpec((1, d), lambda i: (0, 0)),
        ],
        out_specs=pl.BlockSpec((bm, d), lambda i: (i, 0)),
        compiler_params=_PARALLEL,
    )(x2d, wu, bu.reshape(1, h), wd, bd.reshape(1, d),
      g2.reshape(1, d), b2.reshape(1, d), g3.reshape(1, d), b3.reshape(1, d))


def encoder_forward(x, params, *, heads):
    """Pallas forward pass of Encoder(inputs, heads, hidden) with y=None."""
    b, s, d = x.shape
    dh = d // heads
    x2 = x.reshape(b * s, d)

    # --- MultiHeadAttention (q = k = v = x since y is None) ---
    # Single fused QKV projection (one kernel launch instead of three).
    wqkv = jnp.concatenate([params["wq"], params["wk"], params["wv"]], axis=1)
    bqkv = jnp.concatenate([params["bq"], params["bk"], params["bv"]], axis=0)
    qkv = _dense(x2, wqkv, bqkv)                       # (B*S, 3D)
    q, k, v = qkv[:, :d], qkv[:, d:2 * d], qkv[:, 2 * d:]

    def split_heads(t):  # (B*S, D) -> (B*H, S, Dh)   (pure layout, jnp glue)
        return (t.reshape(b, s, heads, dh)
                 .transpose(0, 2, 1, 3)
                 .reshape(b * heads, s, dh))

    ctx = _attention_entmax15(split_heads(q), split_heads(k), split_heads(v))
    ctx = (ctx.reshape(b, heads, s, dh)
              .transpose(0, 2, 1, 3)
              .reshape(b * s, d))

    # x1 = x + LayerNorm(ctx @ Wo + bo)   (one fused kernel)
    x1 = _proj_residual_ln(ctx, params["wo"], params["bo"], x2,
                           params["ln1_g"], params["ln1_b"])

    # out = LN3( x1 + LN2( FFN(x1) ) )    (one fused kernel)
    out = _ffn_residual_ln(x1, params["w_up"], params["b_up"],
                           params["w_down"], params["b_down"],
                           params["ln2_g"], params["ln2_b"],
                           params["ln3_g"], params["ln3_b"])
    return out.reshape(b, s, d)


# ---------------------------------------------------------------------------
# Pure-jnp reference (mirrors the PyTorch module, exact sort-based entmax15)
# ---------------------------------------------------------------------------
_HI = jax.lax.Precision.HIGHEST


def _entmax15_ref(z):
    z = (z - jnp.max(z, axis=-1, keepdims=True)) * 0.5
    zs = jnp.flip(jnp.sort(z, axis=-1), axis=-1)
    k = jnp.arange(1, z.shape[-1] + 1, dtype=z.dtype)
    mean = jnp.cumsum(zs, axis=-1) / k
    mean_sq = jnp.cumsum(zs * zs, axis=-1) / k
    ss = k * (mean_sq - mean * mean)
    delta = (1.0 - ss) / k
    tau = mean - jnp.sqrt(jnp.maximum(delta, 0.0))
    support = jnp.sum((tau <= zs).astype(jnp.int32), axis=-1, keepdims=True)
    tau_star = jnp.take_along_axis(tau, support - 1, axis=-1)
    return jnp.square(jnp.maximum(z - tau_star, 0.0))


def _mish_ref(x):
    sp = jnp.where(x > 20.0, x, jnp.log1p(jnp.exp(jnp.minimum(x, 20.0))))
    return x * jnp.tanh(sp)


def _layernorm_ref(x, g, b, eps=_LN_EPS):
    mu = jnp.mean(x, axis=-1, keepdims=True)
    var = jnp.mean(jnp.square(x - mu), axis=-1, keepdims=True)
    return (x - mu) / jnp.sqrt(var + eps) * g + b


def encoder_forward_ref(x, p, *, heads):
    b, s, d = x.shape
    dh = d // heads

    def lin(t, w, bias):
        return jnp.matmul(t, w, precision=_HI) + bias

    q = lin(x, p["wq"], p["bq"]).reshape(b, s, heads, dh).transpose(0, 2, 1, 3)
    k = lin(x, p["wk"], p["bk"]).reshape(b, s, heads, dh).transpose(0, 2, 1, 3)
    v = lin(x, p["wv"], p["bv"]).reshape(b, s, heads, dh).transpose(0, 2, 1, 3)
    scores = jnp.einsum("bhqd,bhkd->bhqk", q, k, precision=_HI) / math.sqrt(dh)
    attn = _entmax15_ref(scores)
    ctx = (jnp.einsum("bhqk,bhkd->bhqd", attn, v, precision=_HI)
           .transpose(0, 2, 1, 3).reshape(b, s, d))
    y = _layernorm_ref(lin(ctx, p["wo"], p["bo"]), p["ln1_g"], p["ln1_b"])
    x1 = x + y
    h = _mish_ref(lin(x1, p["w_up"], p["b_up"]))
    y = _layernorm_ref(lin(h, p["w_down"], p["b_down"]),
                       p["ln2_g"], p["ln2_b"])
    x2 = x1 + y
    return _layernorm_ref(x2, p["ln3_g"], p["ln3_b"])


# ---------------------------------------------------------------------------
# Test driver
# ---------------------------------------------------------------------------
def _init_params(key, d, hidden):
    ks = jax.random.split(key, 18)

    def n(k, shape, scale):
        return scale * jax.random.normal(k, shape, dtype=jnp.float32)

    inv_d, inv_h = 1.0 / math.sqrt(d), 1.0 / math.sqrt(hidden)
    return {
        "wq": n(ks[0], (d, d), inv_d), "bq": n(ks[1], (d,), 0.1),
        "wk": n(ks[2], (d, d), inv_d), "bk": n(ks[3], (d,), 0.1),
        "wv": n(ks[4], (d, d), inv_d), "bv": n(ks[5], (d,), 0.1),
        "wo": n(ks[6], (d, d), inv_d), "bo": n(ks[7], (d,), 0.1),
        "w_up": n(ks[8], (d, hidden), inv_d), "b_up": n(ks[9], (hidden,), 0.1),
        "w_down": n(ks[10], (hidden, d), inv_h), "b_down": n(ks[11], (d,), 0.1),
        "ln1_g": 1.0 + n(ks[12], (d,), 0.1), "ln1_b": n(ks[13], (d,), 0.05),
        "ln2_g": 1.0 + n(ks[14], (d,), 0.1), "ln2_b": n(ks[15], (d,), 0.05),
        "ln3_g": 1.0 + n(ks[16], (d,), 0.1), "ln3_b": n(ks[17], (d,), 0.05),
    }


if __name__ == "__main__":
    B, S, D, HEADS, HIDDEN = 2, 8, 32, 4, 64  # inputs=32, heads=4, hidden=64

    key = jax.random.PRNGKey(0)
    k_x, k_p = jax.random.split(key)
    x = jax.random.normal(k_x, (B, S, D), dtype=jnp.float32)
    params = _init_params(k_p, D, HIDDEN)

    fwd = jax.jit(functools.partial(encoder_forward, heads=HEADS))
    y = fwd(x, params)
    jax.block_until_ready(y)

    y_ref = encoder_forward_ref(x, params, heads=HEADS)
    assert y.shape == x.shape and y.dtype == x.dtype
    assert jnp.allclose(y, y_ref, atol=2e-3, rtol=2e-3), (
        "Pallas Encoder mismatch vs jnp reference: "
        f"max|diff|={float(jnp.max(jnp.abs(y - y_ref)))}"
    )
    print("KERNEL_OK")
</pallas_src>

<mosaic_0001>
module attributes {stable_mosaic.version = 11 : i64} {
  func.func @_dense_kernel(%arg0: i32, %arg1: memref<16x32xf32, #tpu.memory_space<vmem>>, %arg2: memref<32x96xf32, #tpu.memory_space<vmem>>, %arg3: memref<1x96xf32, #tpu.memory_space<vmem>>, %arg4: memref<16x96xf32, #tpu.memory_space<vmem>>) attributes {dimension_semantics = [#tpu.dimension_semantics<parallel>], iteration_bounds = array<i64: 1>, scalar_prefetch = 0 : i64, scratch_operands = 0 : i64, tpu.core_type = #tpu.core_type<tc>, window_params = [{transform_indices = @transform_0, window_bounds = array<i64: 16, 32>}, {pipeline_mode = #tpu.pipeline_mode<synchronous>, transform_indices = @transform_1, window_bounds = array<i64: 32, 96>}, {pipeline_mode = #tpu.pipeline_mode<synchronous>, transform_indices = @transform_2, window_bounds = array<i64: 1, 96>}, {transform_indices = @transform_3, window_bounds = array<i64: 16, 96>}]} {
    %c0 = arith.constant 0 : index
    %c0_0 = arith.constant 0 : index
    %0 = vector.load %arg1[%c0, %c0_0] : memref<16x32xf32, #tpu.memory_space<vmem>>, vector<16x32xf32>
    %c0_1 = arith.constant 0 : index
    %c0_2 = arith.constant 0 : index
    %1 = vector.load %arg2[%c0_1, %c0_2] : memref<32x96xf32, #tpu.memory_space<vmem>>, vector<32x96xf32>
    %cst = arith.constant dense<0.000000e+00> : vector<16x96xf32>
    %2 = tpu.matmul %0, %1, %cst {dimension_numbers = #tpu.dot_dimension_numbers<[1], [0], [0], [1], [0, 0, 1, 1], [], []>} : vector<16x32xf32>, vector<32x96xf32>, vector<16x96xf32> -> vector<16x96xf32>
    %c0_3 = arith.constant 0 : index
    %c0_4 = arith.constant 0 : index
    %3 = vector.load %arg3[%c0_3, %c0_4] : memref<1x96xf32, #tpu.memory_space<vmem>>, vector<1x96xf32>
    %4 = vector.broadcast %3 : vector<1x96xf32> to vector<16x96xf32>
    %5 = arith.addf %2, %4 : vector<16x96xf32>
    %c0_5 = arith.constant 0 : index
    %c0_6 = arith.constant 0 : index
    %6 = vector.load %arg4[%c0_5, %c0_6] : memref<16x96xf32, #tpu.memory_space<vmem>>, vector<16x96xf32>
    tpu.vector_store %arg4[%c0_5, %c0_6], %5 {strides = array<i32>} : memref<16x96xf32, #tpu.memory_space<vmem>>, vector<16x96xf32>,
    return
  }
  func.func @transform_0(%arg0: i32) -> (i32, i32) {
    %c0_i32 = arith.constant 0 : i32
    %c0_i32_0 = arith.constant 0 : i32
    return %arg0, %c0_i32 : i32, i32
  }
  func.func @transform_1(%arg0: i32) -> (i32, i32) {
    %c0_i32 = arith.constant 0 : i32
    %c0_i32_0 = arith.constant 0 : i32
    %c0_i32_1 = arith.constant 0 : i32
    return %c0_i32, %c0_i32_0 : i32, i32
  }
  func.func @transform_2(%arg0: i32) -> (i32, i32) {
    %c0_i32 = arith.constant 0 : i32
    %c0_i32_0 = arith.constant 0 : i32
    %c0_i32_1 = arith.constant 0 : i32
    return %c0_i32, %c0_i32_0 : i32, i32
  }
  func.func @transform_3(%arg0: i32) -> (i32, i32) {
    %c0_i32 = arith.constant 0 : i32
    %c0_i32_0 = arith.constant 0 : i32
    return %arg0, %c0_i32 : i32, i32
  }
}

module attributes {stable_mosaic.version = 11 : i64} {
  func.func @_attn_entmax15_kernel(%arg0: i32, %arg1: memref<8x8x8xf32, #tpu.memory_space<vmem>>, %arg2: memref<8x8x8xf32, #tpu.memory_space<vmem>>, %arg3: memref<8x8x8xf32, #tpu.memory_space<vmem>>, %arg4: memref<8x8x8xf32, #tpu.memory_space<vmem>>) attributes {dimension_semantics = [#tpu.dimension_semantics<parallel>], iteration_bounds = array<i64: 1>, scalar_prefetch = 0 : i64, scratch_operands = 0 : i64, tpu.core_type = #tpu.core_type<tc>, window_params = [{transform_indices = @transform_0, window_bounds = array<i64: 8, 8, 8>}, {transform_indices = @transform_1, window_bounds = array<i64: 8, 8, 8>}, {transform_indices = @transform_2, window_bounds = array<i64: 8, 8, 8>}, {transform_indices = @transform_3, window_bounds = array<i64: 8, 8, 8>}]} {
    %c0 = arith.constant 0 : index
    %c0_0 = arith.constant 0 : index
    %c0_1 = arith.constant 0 : index
    %0 = vector.load %arg1[%c0, %c0_0, %c0_1] : memref<8x8x8xf32, #tpu.memory_space<vmem>>, vector<8x8x8xf32>
    %c0_2 = arith.constant 0 : index
    %c0_3 = arith.constant 0 : index
    %c0_4 = arith.constant 0 : index
    %1 = vector.load %arg2[%c0_2, %c0_3, %c0_4] : memref<8x8x8xf32, #tpu.memory_space<vmem>>, vector<8x8x8xf32>
    %c0_5 = arith.constant 0 : index
    %c0_6 = arith.constant 0 : index
    %c0_7 = arith.constant 0 : index
    %2 = vector.load %arg3[%c0_5, %c0_6, %c0_7] : memref<8x8x8xf32, #tpu.memory_space<vmem>>, vector<8x8x8xf32>
    "tpu.trace_start"() <{level = 10 : i32, message = "bqd,bkd->bqk"}> : () -> ()
    %cst = arith.constant dense<0.000000e+00> : vector<8x8x8xf32>
    %3 = tpu.matmul %0, %1, %cst {dimension_numbers = #tpu.dot_dimension_numbers<[2], [2], [1], [1], [0, 0, 0, 1, 1, 1], [0], [0]>} : vector<8x8x8xf32>, vector<8x8x8xf32>, vector<8x8x8xf32> -> vector<8x8x8xf32>
    "tpu.trace_stop"() : () -> ()
    %cst_8 = arith.constant 0.353553385 : f32
    %4 = vector.broadcast %cst_8 : f32 to vector<8x8x8xf32>
    %5 = arith.mulf %3, %4 : vector<8x8x8xf32>
    %cst_9 = arith.constant dense<0xFF800000> : vector<8x8xf32>
    %6 = vector.multi_reduction <maximumf>, %5, %cst_9 [2] : vector<8x8x8xf32> to vector<8x8xf32>
    %7 = vector.shape_cast %6 : vector<8x8xf32> to vector<8x8x1xf32>
    %8 = vector.broadcast %7 : vector<8x8x1xf32> to vector<8x8x8xf32>
    %9 = arith.subf %5, %8 : vector<8x8x8xf32>
    %cst_10 = arith.constant 5.000000e-01 : f32
    %10 = vector.broadcast %cst_10 : f32 to vector<8x8x8xf32>
    %11 = arith.mulf %9, %10 : vector<8x8x8xf32>
    %cst_11 = arith.constant -1.000000e+00 : f32
    %12 = vector.broadcast %cst_11 : f32 to vector<8x8x1xf32>
    %cst_12 = arith.constant 0.000000e+00 : f32
    %13 = vector.broadcast %cst_12 : f32 to vector<8x8x1xf32>
    %c0_i32 = arith.constant 0 : i32
    %c30_i32 = arith.constant 30 : i32
    %14 = arith.addi %c0_i32, %c30_i32 : i32
    %c1_i32 = arith.constant 1 : i32
    %15:2 = scf.for %arg5 = %c0_i32 to %14 step %c1_i32 iter_args(%arg6 = %12, %arg7 = %13) -> (vector<8x8x1xf32>, vector<8x8x1xf32>)  : i32 {
      %26 = arith.addf %arg6, %arg7 : vector<8x8x1xf32>
      %cst_19 = arith.constant 5.000000e-01 : f32
      %27 = vector.broadcast %cst_19 : f32 to vector<8x8x1xf32>
      %28 = arith.mulf %27, %26 : vector<8x8x1xf32>
      %29 = vector.broadcast %28 : vector<8x8x1xf32> to vector<8x8x8xf32>
      %30 = arith.subf %11, %29 : vector<8x8x8xf32>
      %cst_20 = arith.constant 0.000000e+00 : f32
      %31 = vector.broadcast %cst_20 : f32 to vector<8x8x8xf32>
      %32 = arith.maximumf %30, %31 : vector<8x8x8xf32>
      %33 = arith.mulf %32, %32 : vector<8x8x8xf32>
      %cst_21 = arith.constant dense<0.000000e+00> : vector<8x8xf32>
      %34 = vector.multi_reduction <add>, %33, %cst_21 [2] : vector<8x8x8xf32> to vector<8x8xf32>
      %35 = vector.shape_cast %34 : vector<8x8xf32> to vector<8x8x1xf32>
      %cst_22 = arith.constant 1.000000e+00 : f32
      %36 = vector.broadcast %cst_22 : f32 to vector<8x8x1xf32>
      %37 = arith.cmpf oge, %35, %36 : vector<8x8x1xf32>
      %38 = arith.select %37, %28, %arg6 : vector<8x8x1xi1>, vector<8x8x1xf32>
      %39 = arith.select %37, %arg7, %28 : vector<8x8x1xi1>, vector<8x8x1xf32>
      scf.yield %38, %39 : vector<8x8x1xf32>, vector<8x8x1xf32>
    }
    %16 = arith.addf %15#0, %15#1 : vector<8x8x1xf32>
    %cst_13 = arith.constant 5.000000e-01 : f32
    %17 = vector.broadcast %cst_13 : f32 to vector<8x8x1xf32>
    %18 = arith.mulf %17, %16 : vector<8x8x1xf32>
    %19 = vector.broadcast %18 : vector<8x8x1xf32> to vector<8x8x8xf32>
    %20 = arith.subf %11, %19 : vector<8x8x8xf32>
    %cst_14 = arith.constant 0.000000e+00 : f32
    %21 = vector.broadcast %cst_14 : f32 to vector<8x8x8xf32>
    %22 = arith.maximumf %20, %21 : vector<8x8x8xf32>
    %23 = arith.mulf %22, %22 : vector<8x8x8xf32>
    "tpu.trace_start"() <{level = 10 : i32, message = "bqk,bkd->bqd"}> : () -> ()
    %cst_15 = arith.constant dense<0.000000e+00> : vector<8x8x8xf32>
    %24 = tpu.matmul %23, %2, %cst_15 {dimension_numbers = #tpu.dot_dimension_numbers<[2], [1], [1], [2], [0, 0, 0, 1, 1, 2], [0], [0]>} : vector<8x8x8xf32>, vector<8x8x8xf32>, vector<8x8x8xf32> -> vector<8x8x8xf32>
    "tpu.trace_stop"() : () -> ()
    %c0_16 = arith.constant 0 : index
    %c0_17 = arith.constant 0 : index
    %c0_18 = arith.constant 0 : index
    %25 = vector.load %arg4[%c0_16, %c0_17, %c0_18] : memref<8x8x8xf32, #tpu.memory_space<vmem>>, vector<8x8x8xf32>
    tpu.vector_store %arg4[%c0_16, %c0_17, %c0_18], %24 {strides = array<i32>} : memref<8x8x8xf32, #tpu.memory_space<vmem>>, vector<8x8x8xf32>,
    return
  }
  func.func @transform_0(%arg0: i32) -> (i32, i32, i32) {
    %c0_i32 = arith.constant 0 : i32
    %c0_i32_0 = arith.constant 0 : i32
    %c0_i32_1 = arith.constant 0 : i32
    return %arg0, %c0_i32, %c0_i32_0 : i32, i32, i32
  }
  func.func @transform_1(%arg0: i32) -> (i32, i32, i32) {
    %c0_i32 = arith.constant 0 : i32
    %c0_i32_0 = arith.constant 0 : i32
    %c0_i32_1 = arith.constant 0 : i32
    return %arg0, %c0_i32, %c0_i32_0 : i32, i32, i32
  }
  func.func @transform_2(%arg0: i32) -> (i32, i32, i32) {
    %c0_i32 = arith.constant 0 : i32
    %c0_i32_0 = arith.constant 0 : i32
    %c0_i32_1 = arith.constant 0 : i32
    return %arg0, %c0_i32, %c0_i32_0 : i32, i32, i32
  }
  func.func @transform_3(%arg0: i32) -> (i32, i32, i32) {
    %c0_i32 = arith.constant 0 : i32
    %c0_i32_0 = arith.constant 0 : i32
    %c0_i32_1 = arith.constant 0 : i32
    return %arg0, %c0_i32, %c0_i32_0 : i32, i32, i32
  }
}

module attributes {stable_mosaic.version = 11 : i64} {
  func.func @_proj_residual_ln_kernel(%arg0: i32, %arg1: memref<16x32xf32, #tpu.memory_space<vmem>>, %arg2: memref<32x32xf32, #tpu.memory_space<vmem>>, %arg3: memref<1x32xf32, #tpu.memory_space<vmem>>, %arg4: memref<16x32xf32, #tpu.memory_space<vmem>>, %arg5: memref<1x32xf32, #tpu.memory_space<vmem>>, %arg6: memref<1x32xf32, #tpu.memory_space<vmem>>, %arg7: memref<16x32xf32, #tpu.memory_space<vmem>>) attributes {dimension_semantics = [#tpu.dimension_semantics<parallel>], iteration_bounds = array<i64: 1>, scalar_prefetch = 0 : i64, scratch_operands = 0 : i64, tpu.core_type = #tpu.core_type<tc>, window_params = [{transform_indices = @transform_0, window_bounds = array<i64: 16, 32>}, {pipeline_mode = #tpu.pipeline_mode<synchronous>, transform_indices = @transform_1, window_bounds = array<i64: 32, 32>}, {pipeline_mode = #tpu.pipeline_mode<synchronous>, transform_indices = @transform_2, window_bounds = array<i64: 1, 32>}, {transform_indices = @transform_3, window_bounds = array<i64: 16, 32>}, {pipeline_mode = #tpu.pipeline_mode<synchronous>, transform_indices = @transform_4, window_bounds = array<i64: 1, 32>}, {pipeline_mode = #tpu.pipeline_mode<synchronous>, transform_indices = @transform_5, window_bounds = array<i64: 1, 32>}, {transform_indices = @transform_6, window_bounds = array<i64: 16, 32>}]} {
    %c0 = arith.constant 0 : index
    %c0_0 = arith.constant 0 : index
    %0 = vector.load %arg1[%c0, %c0_0] : memref<16x32xf32, #tpu.memory_space<vmem>>, vector<16x32xf32>
    %c0_1 = arith.constant 0 : index
    %c0_2 = arith.constant 0 : index
    %1 = vector.load %arg2[%c0_1, %c0_2] : memref<32x32xf32, #tpu.memory_space<vmem>>, vector<32x32xf32>
    %cst = arith.constant dense<0.000000e+00> : vector<16x32xf32>
    %2 = tpu.matmul %0, %1, %cst {dimension_numbers = #tpu.dot_dimension_numbers<[1], [0], [0], [1], [0, 0, 1, 1], [], []>} : vector<16x32xf32>, vector<32x32xf32>, vector<16x32xf32> -> vector<16x32xf32>
    %c0_3 = arith.constant 0 : index
    %c0_4 = arith.constant 0 : index
    %3 = vector.load %arg3[%c0_3, %c0_4] : memref<1x32xf32, #tpu.memory_space<vmem>>, vector<1x32xf32>
    %4 = vector.broadcast %3 : vector<1x32xf32> to vector<16x32xf32>
    %5 = arith.addf %2, %4 : vector<16x32xf32>
    %c0_5 = arith.constant 0 : index
    %c0_6 = arith.constant 0 : index
    %6 = vector.load %arg5[%c0_5, %c0_6] : memref<1x32xf32, #tpu.memory_space<vmem>>, vector<1x32xf32>
    %c0_7 = arith.constant 0 : index
    %c0_8 = arith.constant 0 : index
    %7 = vector.load %arg6[%c0_7, %c0_8] : memref<1x32xf32, #tpu.memory_space<vmem>>, vector<1x32xf32>
    %cst_9 = arith.constant dense<0.000000e+00> : vector<16xf32>
    %8 = vector.multi_reduction <add>, %5, %cst_9 [1] : vector<16x32xf32> to vector<16xf32>
    %9 = vector.shape_cast %8 : vector<16xf32> to vector<16x1xf32>
    %cst_10 = arith.constant 3.200000e+01 : f32
    %10 = vector.broadcast %cst_10 : f32 to vector<16x1xf32>
    %11 = arith.divf %9, %10 : vector<16x1xf32>
    %12 = vector.broadcast %11 : vector<16x1xf32> to vector<16x32xf32>
    %13 = arith.subf %5, %12 : vector<16x32xf32>
    %14 = arith.mulf %13, %13 : vector<16x32xf32>
    %cst_11 = arith.constant dense<0.000000e+00> : vector<16xf32>
    %15 = vector.multi_reduction <add>, %14, %cst_11 [1] : vector<16x32xf32> to vector<16xf32>
    %16 = vector.shape_cast %15 : vector<16xf32> to vector<16x1xf32>
    %cst_12 = arith.constant 3.200000e+01 : f32
    %17 = vector.broadcast %cst_12 : f32 to vector<16x1xf32>
    %18 = arith.divf %16, %17 : vector<16x1xf32>
    %cst_13 = arith.constant 9.99999974E-6 : f32
    %19 = vector.broadcast %cst_13 : f32 to vector<16x1xf32>
    %20 = arith.addf %18, %19 : vector<16x1xf32>
    %21 = math.rsqrt %20 : vector<16x1xf32>
    %22 = vector.broadcast %21 : vector<16x1xf32> to vector<16x32xf32>
    %23 = arith.mulf %13, %22 : vector<16x32xf32>
    %24 = vector.broadcast %6 : vector<1x32xf32> to vector<16x32xf32>
    %25 = arith.mulf %23, %24 : vector<16x32xf32>
    %26 = vector.broadcast %7 : vector<1x32xf32> to vector<16x32xf32>
    %27 = arith.addf %25, %26 : vector<16x32xf32>
    %c0_14 = arith.constant 0 : index
    %c0_15 = arith.constant 0 : index
    %28 = vector.load %arg4[%c0_14, %c0_15] : memref<16x32xf32, #tpu.memory_space<vmem>>, vector<16x32xf32>
    %29 = arith.addf %28, %27 : vector<16x32xf32>
    %c0_16 = arith.constant 0 : index
    %c0_17 = arith.constant 0 : index
    %30 = vector.load %arg7[%c0_16, %c0_17] : memref<16x32xf32, #tpu.memory_space<vmem>>, vector<16x32xf32>
    tpu.vector_store %arg7[%c0_16, %c0_17], %29 {strides = array<i32>} : memref<16x32xf32, #tpu.memory_space<vmem>>, vector<16x32xf32>,
    return
  }
  func.func @transform_0(%arg0: i32) -> (i32, i32) {
    %c0_i32 = arith.constant 0 : i32
    %c0_i32_0 = arith.constant 0 : i32
    return %arg0, %c0_i32 : i32, i32
  }
  func.func @transform_1(%arg0: i32) -> (i32, i32) {
    %c0_i32 = arith.constant 0 : i32
    %c0_i32_0 = arith.constant 0 : i32
    %c0_i32_1 = arith.constant 0 : i32
    return %c0_i32, %c0_i32_0 : i32, i32
  }
  func.func @transform_2(%arg0: i32) -> (i32, i32) {
    %c0_i32 = arith.constant 0 : i32
    %c0_i32_0 = arith.constant 0 : i32
    %c0_i32_1 = arith.constant 0 : i32
    return %c0_i32, %c0_i32_0 : i32, i32
  }
  func.func @transform_3(%arg0: i32) -> (i32, i32) {
    %c0_i32 = arith.constant 0 : i32
    %c0_i32_0 = arith.constant 0 : i32
    return %arg0, %c0_i32 : i32, i32
  }
  func.func @transform_4(%arg0: i32) -> (i32, i32) {
    %c0_i32 = arith.constant 0 : i32
    %c0_i32_0 = arith.constant 0 : i32
    %c0_i32_1 = arith.constant 0 : i32
    return %c0_i32, %c0_i32_0 : i32, i32
  }
  func.func @transform_5(%arg0: i32) -> (i32, i32) {
    %c0_i32 = arith.constant 0 : i32
    %c0_i32_0 = arith.constant 0 : i32
    %c0_i32_1 = arith.constant 0 : i32
    return %c0_i32, %c0_i32_0 : i32, i32
  }
  func.func @transform_6(%arg0: i32) -> (i32, i32) {
    %c0_i32 = arith.constant 0 : i32
    %c0_i32_0 = arith.constant 0 : i32
    return %arg0, %c0_i32 : i32, i32
  }
}

module attributes {stable_mosaic.version = 11 : i64} {
  func.func @_ffn_residual_ln_kernel(%arg0: i32, %arg1: memref<16x32xf32, #tpu.memory_space<vmem>>, %arg2: memref<32x64xf32, #tpu.memory_space<vmem>>, %arg3: memref<1x64xf32, #tpu.memory_space<vmem>>, %arg4: memref<64x32xf32, #tpu.memory_space<vmem>>, %arg5: memref<1x32xf32, #tpu.memory_space<vmem>>, %arg6: memref<1x32xf32, #tpu.memory_space<vmem>>, %arg7: memref<1x32xf32, #tpu.memory_space<vmem>>, %arg8: memref<1x32xf32, #tpu.memory_space<vmem>>, %arg9: memref<1x32xf32, #tpu.memory_space<vmem>>, %arg10: memref<16x32xf32, #tpu.memory_space<vmem>>) attributes {dimension_semantics = [#tpu.dimension_semantics<parallel>], iteration_bounds = array<i64: 1>, scalar_prefetch = 0 : i64, scratch_operands = 0 : i64, tpu.core_type = #tpu.core_type<tc>, window_params = [{transform_indices = @transform_0, window_bounds = array<i64: 16, 32>}, {pipeline_mode = #tpu.pipeline_mode<synchronous>, transform_indices = @transform_1, window_bounds = array<i64: 32, 64>}, {pipeline_mode = #tpu.pipeline_mode<synchronous>, transform_indices = @transform_2, window_bounds = array<i64: 1, 64>}, {pipeline_mode = #tpu.pipeline_mode<synchronous>, transform_indices = @transform_3, window_bounds = array<i64: 64, 32>}, {pipeline_mode = #tpu.pipeline_mode<synchronous>, transform_indices = @transform_4, window_bounds = array<i64: 1, 32>}, {pipeline_mode = #tpu.pipeline_mode<synchronous>, transform_indices = @transform_5, window_bounds = array<i64: 1, 32>}, {pipeline_mode = #tpu.pipeline_mode<synchronous>, transform_indices = @transform_6, window_bounds = array<i64: 1, 32>}, {pipeline_mode = #tpu.pipeline_mode<synchronous>, transform_indices = @transform_7, window_bounds = array<i64: 1, 32>}, {pipeline_mode = #tpu.pipeline_mode<synchronous>, transform_indices = @transform_8, window_bounds = array<i64: 1, 32>}, {transform_indices = @transform_9, window_bounds = array<i64: 16, 32>}]} {
    %c0 = arith.constant 0 : index
    %c0_0 = arith.constant 0 : index
    %0 = vector.load %arg1[%c0, %c0_0] : memref<16x32xf32, #tpu.memory_space<vmem>>, vector<16x32xf32>
    %c0_1 = arith.constant 0 : index
    %c0_2 = arith.constant 0 : index
    %1 = vector.load %arg2[%c0_1, %c0_2] : memref<32x64xf32, #tpu.memory_space<vmem>>, vector<32x64xf32>
    %cst = arith.constant dense<0.000000e+00> : vector<16x64xf32>
    %2 = tpu.matmul %0, %1, %cst {dimension_numbers = #tpu.dot_dimension_numbers<[1], [0], [0], [1], [0, 0, 1, 1], [], []>} : vector<16x32xf32>, vector<32x64xf32>, vector<16x64xf32> -> vector<16x64xf32>
    %c0_3 = arith.constant 0 : index
    %c0_4 = arith.constant 0 : index
    %3 = vector.load %arg3[%c0_3, %c0_4] : memref<1x64xf32, #tpu.memory_space<vmem>>, vector<1x64xf32>
    %4 = vector.broadcast %3 : vector<1x64xf32> to vector<16x64xf32>
    %5 = arith.addf %2, %4 : vector<16x64xf32>
    %cst_5 = arith.constant 2.000000e+01 : f32
    %6 = vector.broadcast %cst_5 : f32 to vector<16x64xf32>
    %7 = arith.minimumf %5, %6 : vector<16x64xf32>
    %8 = math.exp %7 : vector<16x64xf32>
    %cst_6 = arith.constant 2.000000e+00 : f32
    %9 = vector.broadcast %cst_6 : f32 to vector<16x64xf32>
    %10 = arith.addf %8, %9 : vector<16x64xf32>
    %11 = arith.mulf %8, %10 : vector<16x64xf32>
    %12 = arith.mulf %5, %11 : vector<16x64xf32>
    %cst_7 = arith.constant 2.000000e+00 : f32
    %13 = vector.broadcast %cst_7 : f32 to vector<16x64xf32>
    %14 = arith.addf %11, %13 : vector<16x64xf32>
    %15 = tpu.reciprocal %14 : vector<16x64xf32> -> vector<16x64xf32>
    %16 = arith.mulf %12, %15 : vector<16x64xf32>
    %cst_8 = arith.constant 2.000000e+01 : f32
    %17 = vector.broadcast %cst_8 : f32 to vector<16x64xf32>
    %18 = arith.cmpf ogt, %5, %17 : vector<16x64xf32>
    %19 = arith.select %18, %5, %16 : vector<16x64xi1>, vector<16x64xf32>
    %c0_9 = arith.constant 0 : index
    %c0_10 = arith.constant 0 : index
    %20 = vector.load %arg4[%c0_9, %c0_10] : memref<64x32xf32, #tpu.memory_space<vmem>>, vector<64x32xf32>
    %cst_11 = arith.constant dense<0.000000e+00> : vector<16x32xf32>
    %21 = tpu.matmul %19, %20, %cst_11 {dimension_numbers = #tpu.dot_dimension_numbers<[1], [0], [0], [1], [0, 0, 1, 1], [], []>} : vector<16x64xf32>, vector<64x32xf32>, vector<16x32xf32> -> vector<16x32xf32>
    %c0_12 = arith.constant 0 : index
    %c0_13 = arith.constant 0 : index
    %22 = vector.load %arg5[%c0_12, %c0_13] : memref<1x32xf32, #tpu.memory_space<vmem>>, vector<1x32xf32>
    %23 = vector.broadcast %22 : vector<1x32xf32> to vector<16x32xf32>
    %24 = arith.addf %21, %23 : vector<16x32xf32>
    %c0_14 = arith.constant 0 : index
    %c0_15 = arith.constant 0 : index
    %25 = vector.load %arg6[%c0_14, %c0_15] : memref<1x32xf32, #tpu.memory_space<vmem>>, vector<1x32xf32>
    %c0_16 = arith.constant 0 : index
    %c0_17 = arith.constant 0 : index
    %26 = vector.load %arg7[%c0_16, %c0_17] : memref<1x32xf32, #tpu.memory_space<vmem>>, vector<1x32xf32>
    %cst_18 = arith.constant dense<0.000000e+00> : vector<16xf32>
    %27 = vector.multi_reduction <add>, %24, %cst_18 [1] : vector<16x32xf32> to vector<16xf32>
    %28 = vector.shape_cast %27 : vector<16xf32> to vector<16x1xf32>
    %cst_19 = arith.constant 3.200000e+01 : f32
    %29 = vector.broadcast %cst_19 : f32 to vector<16x1xf32>
    %30 = arith.divf %28, %29 : vector<16x1xf32>
    %31 = vector.broadcast %30 : vector<16x1xf32> to vector<16x32xf32>
    %32 = arith.subf %24, %31 : vector<16x32xf32>
    %33 = arith.mulf %32, %32 : vector<16x32xf32>
    %cst_20 = arith.constant dense<0.000000e+00> : vector<16xf32>
    %34 = vector.multi_reduction <add>, %33, %cst_20 [1] : vector<16x32xf32> to vector<16xf32>
    %35 = vector.shape_cast %34 : vector<16xf32> to vector<16x1xf32>
    %cst_21 = arith.constant 3.200000e+01 : f32
    %36 = vector.broadcast %cst_21 : f32 to vector<16x1xf32>
    %37 = arith.divf %35, %36 : vector<16x1xf32>
    %cst_22 = arith.constant 9.99999974E-6 : f32
    %38 = vector.broadcast %cst_22 : f32 to vector<16x1xf32>
    %39 = arith.addf %37, %38 : vector<16x1xf32>
    %40 = math.rsqrt %39 : vector<16x1xf32>
    %41 = vector.broadcast %40 : vector<16x1xf32> to vector<16x32xf32>
    %42 = arith.mulf %32, %41 : vector<16x32xf32>
    %43 = vector.broadcast %25 : vector<1x32xf32> to vector<16x32xf32>
    %44 = arith.mulf %42, %43 : vector<16x32xf32>
    %45 = vector.broadcast %26 : vector<1x32xf32> to vector<16x32xf32>
    %46 = arith.addf %44, %45 : vector<16x32xf32>
    %47 = arith.addf %0, %46 : vector<16x32xf32>
    %c0_23 = arith.constant 0 : index
    %c0_24 = arith.constant 0 : index
    %48 = vector.load %arg8[%c0_23, %c0_24] : memref<1x32xf32, #tpu.memory_space<vmem>>, vector<1x32xf32>
    %c0_25 = arith.constant 0 : index
    %c0_26 = arith.constant 0 : index
    %49 = vector.load %arg9[%c0_25, %c0_26] : memref<1x32xf32, #tpu.memory_space<vmem>>, vector<1x32xf32>
    %cst_27 = arith.constant dense<0.000000e+00> : vector<16xf32>
    %50 = vector.multi_reduction <add>, %47, %cst_27 [1] : vector<16x32xf32> to vector<16xf32>
    %51 = vector.shape_cast %50 : vector<16xf32> to vector<16x1xf32>
    %cst_28 = arith.constant 3.200000e+01 : f32
    %52 = vector.broadcast %cst_28 : f32 to vector<16x1xf32>
    %53 = arith.divf %51, %52 : vector<16x1xf32>
    %54 = vector.broadcast %53 : vector<16x1xf32> to vector<16x32xf32>
    %55 = arith.subf %47, %54 : vector<16x32xf32>
    %56 = arith.mulf %55, %55 : vector<16x32xf32>
    %cst_29 = arith.constant dense<0.000000e+00> : vector<16xf32>
    %57 = vector.multi_reduction <add>, %56, %cst_29 [1] : vector<16x32xf32> to vector<16xf32>
    %58 = vector.shape_cast %57 : vector<16xf32> to vector<16x1xf32>
    %cst_30 = arith.constant 3.200000e+01 : f32
    %59 = vector.broadcast %cst_30 : f32 to vector<16x1xf32>
    %60 = arith.divf %58, %59 : vector<16x1xf32>
    %cst_31 = arith.constant 9.99999974E-6 : f32
    %61 = vector.broadcast %cst_31 : f32 to vector<16x1xf32>
    %62 = arith.addf %60, %61 : vector<16x1xf32>
    %63 = math.rsqrt %62 : vector<16x1xf32>
    %64 = vector.broadcast %63 : vector<16x1xf32> to vector<16x32xf32>
    %65 = arith.mulf %55, %64 : vector<16x32xf32>
    %66 = vector.broadcast %48 : vector<1x32xf32> to vector<16x32xf32>
    %67 = arith.mulf %65, %66 : vector<16x32xf32>
    %68 = vector.broadcast %49 : vector<1x32xf32> to vector<16x32xf32>
    %69 = arith.addf %67, %68 : vector<16x32xf32>
    %c0_32 = arith.constant 0 : index
    %c0_33 = arith.constant 0 : index
    %70 = vector.load %arg10[%c0_32, %c0_33] : memref<16x32xf32, #tpu.memory_space<vmem>>, vector<16x32xf32>
    tpu.vector_store %arg10[%c0_32, %c0_33], %69 {strides = array<i32>} : memref<16x32xf32, #tpu.memory_space<vmem>>, vector<16x32xf32>,
    return
  }
  func.func @transform_0(%arg0: i32) -> (i32, i32) {
    %c0_i32 = arith.constant 0 : i32
    %c0_i32_0 = arith.constant 0 : i32
    return %arg0, %c0_i32 : i32, i32
  }
  func.func @transform_1(%arg0: i32) -> (i32, i32) {
    %c0_i32 = arith.constant 0 : i32
    %c0_i32_0 = arith.constant 0 : i32
    %c0_i32_1 = arith.constant 0 : i32
    return %c0_i32, %c0_i32_0 : i32, i32
  }
  func.func @transform_2(%arg0: i32) -> (i32, i32) {
    %c0_i32 = arith.constant 0 : i32
    %c0_i32_0 = arith.constant 0 : i32
    %c0_i32_1 = arith.constant 0 : i32
    return %c0_i32, %c0_i32_0 : i32, i32
  }
  func.func @transform_3(%arg0: i32) -> (i32, i32) {
    %c0_i32 = arith.constant 0 : i32
    %c0_i32_0 = arith.constant 0 : i32
    %c0_i32_1 = arith.constant 0 : i32
    return %c0_i32, %c0_i32_0 : i32, i32
  }
  func.func @transform_4(%arg0: i32) -> (i32, i32) {
    %c0_i32 = arith.constant 0 : i32
    %c0_i32_0 = arith.constant 0 : i32
    %c0_i32_1 = arith.constant 0 : i32
    return %c0_i32, %c0_i32_0 : i32, i32
  }
  func.func @transform_5(%arg0: i32) -> (i32, i32) {
    %c0_i32 = arith.constant 0 : i32
    %c0_i32_0 = arith.constant 0 : i32
    %c0_i32_1 = arith.constant 0 : i32
    return %c0_i32, %c0_i32_0 : i32, i32
  }
  func.func @transform_6(%arg0: i32) -> (i32, i32) {
    %c0_i32 = arith.constant 0 : i32
    %c0_i32_0 = arith.constant 0 : i32
    %c0_i32_1 = arith.constant 0 : i32
    return %c0_i32, %c0_i32_0 : i32, i32
  }
  func.func @transform_7(%arg0: i32) -> (i32, i32) {
    %c0_i32 = arith.constant 0 : i32
    %c0_i32_0 = arith.constant 0 : i32
    %c0_i32_1 = arith.constant 0 : i32
    return %c0_i32, %c0_i32_0 : i32, i32
  }
  func.func @transform_8(%arg0: i32) -> (i32, i32) {
    %c0_i32 = arith.constant 0 : i32
    %c0_i32_0 = arith.constant 0 : i32
    %c0_i32_1 = arith.constant 0 : i32
    return %c0_i32, %c0_i32_0 : i32, i32
  }
  func.func @transform_9(%arg0: i32) -> (i32, i32) {
    %c0_i32 = arith.constant 0 : i32
    %c0_i32_0 = arith.constant 0 : i32
    return %arg0, %c0_i32 : i32, i32
  }
}

</mosaic_0001>

<bundles_post_ra>
// kernel: encoder_forward.4
= control target key start
LH: loop header
LB: loop body
LE: loop exit
PB: predicated region body
PF: predicated region fallthrough
CT: control target
= control target key end

     0   :  { %vm27_vm0 = vcmask 261120   ;;  %vm109_vm1 = vcmask 785408   ;;  %s185_s1 = inlined_call_operand.vmem [shape: f32[32,96], index: 1, kind: input, shape index: {}]   ;;  %s186_s0 = inlined_call_operand.vmem [shape: f32[16,32], index: 0, kind: input, shape index: {}]   ;;  %s187_s2 = inlined_call_operand.vmem [shape: f32[1,96], index: 2, kind: input, shape index: {}]   ;;  %s188_s3 = inlined_call_operand.vmem [shape: f32[16,96], index: 3, kind: output, shape index: {}]  }
   0x1   :  { %v19_v0 = vld [vmem:[%s185_s1 + $0x18] sm:$0xff]  ;;  %v18_v1 = vld [vmem:[%s185_s1 + $0x10] sm:$0xff]  ;;  %v14_v2 = vld [vmem:[%s186_s0] sm:$0xff] }
   0x2   :  { %125 = vmatprep.subr.mxu0 %v19_v0  ;;  %v17_v3 = vld [vmem:[%s185_s1 + $0x8] sm:$0xff]  ;;  %133 = vmatprep.mubr.msk.f32.mxu0 %vm27_vm0, %v14_v2  ;;  %v16_v4 = vld [vmem:[%s185_s1] sm:$0xff] }
   0x3   :  { %126 = vmatpush3.msra.mxu0 %v19_v0  ;;  %v15_v5 = vld [vmem:[%s186_s0 + $0x8] sm:$0xff]  ;;  %v116_v6 = vld [vmem:[%s187_s2] ss:$0 sm:$0xff] }
   0x4   :  { %127 = vmatprep.subr.mxu0 %v18_v1 }
   0x5   :  { %128 = vmatpush3.msra.mxu0 %v18_v1 }
   0x6   :  { %129 = vmatprep.subr.mxu0 %v17_v3 }
   0x7   :  { %130 = vmatpush3.msra.mxu0 %v17_v3 }
   0x8   :  { %131 = vmatprep.subr.mxu0 %v16_v4 }
   0x9   :  { %132 = vmatpush3.msra.mxu0 %v16_v4 }
   0xa   :  { %134 = vmatmul.mubr.msk.f32.vlgmr.msra.gmra.mxu0 %vm27_vm0, %v15_v5 }
  0xca   :  { %v135_v7 = vpop.f32.mrf.mxu0 }
  0xcb   :  { %v106_v8 = vadd.f32 %v135_v7, %v116_v6 }
  0xcc   :  { %v100_v9 = vpop.f32.mrf.mxu0 }
  0xcd   :  { %111 = vst.msk [vmem:[%s188_s3 + $0x8] sm:$0xff] %vm109_vm1, %v106_v8  ;;  %v101_v10 = vadd.f32 %v116_v6, %v100_v9 }
  0xcf   :  { %110 = vst.msk [vmem:[%s188_s3] sm:$0xff] %vm109_vm1, %v101_v10 }

// kernel: encoder_forward.6
= control target key start
LH: loop header
LB: loop body
LE: loop exit
PB: predicated region body
PF: predicated region fallthrough
CT: control target
= control target key end

     0   :  { %vm36_vm0 = vcmask 261120   ;;  %s281_s1 = inlined_call_operand.vmem [shape: f32[32,32], index: 1, kind: input, shape index: {}]   ;;  %s282_s0 = inlined_call_operand.vmem [shape: f32[16,32], index: 0, kind: input, shape index: {}]   ;;  %s283_s2 = inlined_call_operand.vmem [shape: f32[1,32], index: 2, kind: input, shape index: {}]   ;;  %s284_s4 = inlined_call_operand.vmem [shape: f32[1,32], index: 4, kind: input, shape index: {}]   ;;  %s285_s5 = inlined_call_operand.vmem [shape: f32[1,32], index: 5, kind: input, shape index: {}]   ;;  %s286_s3 = inlined_call_operand.vmem [shape: f32[16,32], index: 3, kind: input, shape index: {}]   ;;  %s287_s6 = inlined_call_operand.vmem [shape: f32[16,32], index: 6, kind: output, shape index: {}]  }
   0x1   :  { %v28_v0 = vld [vmem:[%s281_s1 + $0x18] sm:$0xff]  ;;  %v27_v1 = vld [vmem:[%s281_s1 + $0x10] sm:$0xff]  ;;  %v23_v2 = vld [vmem:[%s282_s0] sm:$0xff] }
   0x2   :  { %184 = vmatprep.subr.mxu0 %v28_v0  ;;  %v26_v3 = vld [vmem:[%s281_s1 + $0x8] sm:$0xff]  ;;  %192 = vmatprep.mubr.msk.f32.mxu0 %vm36_vm0, %v23_v2  ;;  %v25_v4 = vld [vmem:[%s281_s1] sm:$0xff] }
   0x3   :  { %185 = vmatpush3.msra.mxu0 %v28_v0  ;;  %v24_v5 = vld [vmem:[%s282_s0 + $0x8] sm:$0xff]  ;;  %v173_v7 = vld [vmem:[%s283_s2] ss:$0 sm:$0xff] }
   0x4   :  { %186 = vmatprep.subr.mxu0 %v27_v1  ;;  %v176_v30 = vld [vmem:[%s284_s4] ss:$0 sm:$0xff]  ;;  %v164_v40 = vld [vmem:[%s286_s3 + $0x8] sm:$0xff] }
   0x5   :  { %187 = vmatpush3.msra.mxu0 %v27_v1  ;;  %v177_v32 = vld [vmem:[%s285_s5] ss:$0 sm:$0xff] }
   0x6   :  { %188 = vmatprep.subr.mxu0 %v26_v3  ;;  %v163_v35 = vld [vmem:[%s286_s3] sm:$0xff] }
   0x7   :  { %189 = vmatpush3.msra.mxu0 %v26_v3 }
   0x8   :  { %190 = vmatprep.subr.mxu0 %v25_v4 }
   0x9   :  { %191 = vmatpush3.msra.mxu0 %v25_v4 }
   0xa   :  { %193 = vmatmul.mubr.msk.f32.vlgmr.msra.gmra.mxu0 %vm36_vm0, %v24_v5 }
  0xca   :  { %v194_v6 = vpop.f32.mrf.mxu0 }
  0xcb   :  { %v115_v10 = vadd.f32 %v194_v6, %v173_v7 }
  0xcc   :  { %v109_v8 = vpop.f32.mrf.mxu0 }
  0xcd   :  { %v110_v9 = vadd.f32 %v173_v7, %v109_v8  ;;  %v123_v12 = vsel %vm36_vm0, %v115_v10, 0.0 }
  0xcf   :  { %v120_v11 = vsel %vm36_vm0, %v110_v9, 0.0 }
  0xd0   :  { %121 = vadd.xlane.f32.xlu0 %v120_v11 }
  0xd4   :  { %124 = vadd.xlane.f32.xlu0 %v123_v12 }
 0x159   :  { %v122_v13 = vpop.xlane.xlu0 %121 }
 0x15a   :  { %v127_v14 = vmul.f32 0.03125, %v122_v13 }
 0x15c   :  { %v129_v15 = vsub.f32 %v110_v9, %v127_v14 }
 0x15d   :  { %v125_v16 = vpop.xlane.xlu0 %124 }
 0x15e   :  { %v128_v17 = vmul.f32 0.03125, %v125_v16  ;;  %v131_v18 = vmul.f32 %v129_v15, %v129_v15 }
 0x160   :  { %v130_v19 = vsub.f32 %v115_v10, %v128_v17  ;;  %v133_v20 = vsel %vm36_vm0, %v131_v18, 0.0 }
 0x161   :  { %134 = vadd.xlane.f32.xlu1 %v133_v20 }
 0x162   :  { %v132_v21 = vmul.f32 %v130_v19, %v130_v19 }
 0x164   :  { %v136_v22 = vsel %vm36_vm0, %v132_v21, 0.0 }
 0x165   :  { %137 = vadd.xlane.f32.xlu1 %v136_v22 }
 0x1ea   :  { %v135_v23 = vpop.xlane.xlu1 %134 }
 0x1eb   :  { %v139_v24 = vmul.f32 0.03125, %v135_v23 }
 0x1ed   :  { %v141_v25 = vadd.f32 1e-05, %v139_v24 }
 0x1ee   :  { %v138_v26 = vpop.xlane.xlu1 %137 }
 0x1ef   :  { %195 = vrsqrt.f32 %v141_v25  ;;  %v140_v27 = vmul.f32 0.03125, %v138_v26 }
 0x1f1   :  { %v142_v28 = vadd.f32 1e-05, %v140_v27 }
 0x1f3   :  { %197 = vrsqrt.f32 %v142_v28 }
 0x1fc   :  { %v196_v29 = vpop.eup %195 }
 0x1fd   :  { %v145_v31 = vmul.f32 %v196_v29, %v129_v15 }
 0x1ff   :  { %v153_v33 = vmul.f32 %v176_v30, %v145_v31 }
 0x200   :  { %v198_v34 = vpop.eup %197 }
 0x201   :  { %v161_v36 = vadd.f32 %v177_v32, %v153_v33  ;;  %v146_v37 = vmul.f32 %v198_v34, %v130_v19 }
 0x203   :  { %v165_v38 = vadd.f32 %v163_v35, %v161_v36  ;;  %v154_v39 = vmul.f32 %v176_v30, %v146_v37 }
 0x205   :  { %167 = vst.msk [vmem:[%s287_s6] sm:$0xff] %vm36_vm0, %v165_v38  ;;  %v162_v41 = vadd.f32 %v177_v32, %v154_v39 }
 0x207   :  { %v166_v42 = vadd.f32 %v164_v40, %v162_v41 }
 0x209   :  { %168 = vst.msk [vmem:[%s287_s6 + $0x8] sm:$0xff] %vm36_vm0, %v166_v42 }

// kernel: encoder_forward.7
= control target key start
LH: loop header
LB: loop body
LE: loop exit
PB: predicated region body
PF: predicated region fallthrough
CT: control target
= control target key end

     0   :  { %vm46_vm0 = vcmask 261120   ;;  %s589_s0 = inlined_call_operand.vmem [shape: f32[16,32], index: 0, kind: input, shape index: {}]   ;;  %s590_s1 = inlined_call_operand.vmem [shape: f32[32,64], index: 1, kind: input, shape index: {}]   ;;  %s591_s2 = inlined_call_operand.vmem [shape: f32[1,64], index: 2, kind: input, shape index: {}]   ;;  %s592_s3 = inlined_call_operand.vmem [shape: f32[64,32], index: 3, kind: input, shape index: {}]   ;;  %s593_s4 = inlined_call_operand.vmem [shape: f32[1,32], index: 4, kind: input, shape index: {}]   ;;  %s594_s5 = inlined_call_operand.vmem [shape: f32[1,32], index: 5, kind: input, shape index: {}]   ;;  %s595_s6 = inlined_call_operand.vmem [shape: f32[1,32], index: 6, kind: input, shape index: {}]   ;;  %s596_s7 = inlined_call_operand.vmem [shape: f32[1,32], index: 7, kind: input, shape index: {}]   ;;  %s597_s8 = inlined_call_operand.vmem [shape: f32[1,32], index: 8, kind: input, shape index: {}]   ;;  %s598_s9 = inlined_call_operand.hbm [shape: f32[16,32], index: 9, kind: output, shape index: {}]  }
   0x1   :  { %v38_v0 = vld [vmem:[%s590_s1 + $0x18] sm:$0xff]  ;;  %v37_v1 = vld [vmem:[%s590_s1 + $0x10] sm:$0xff]  ;;  %v515_v2 = vld [vmem:[%s589_s0] sm:$0xff] }
   0x2   :  { %382 = vmatprep.subr.mxu0 %v38_v0  ;;  %v36_v3 = vld [vmem:[%s590_s1 + $0x8] sm:$0xff]  ;;  %390 = vmatprep.mubr.msk.f32.mxu0 %vm46_vm0, %v515_v2 }
   0x3   :  { %383 = vmatpush3.msra.mxu0 %v38_v0 }
   0x4   :  { %14 = vsyncpa [#allocation3], 0  ;;  %384 = vmatprep.subr.mxu0 %v37_v1  ;;  %v35_v4 = vld [vmem:[%s590_s1] sm:$0xff]  ;;  %v528_v5 = vld [vmem:[%s589_s0 + $0x8] sm:$0xff]  ;;  %vm165_vm1 = vcmask 523264   ;;  %s453_s21 = smov [#allocation2]  }
   0x5   :  { %385 = vmatpush3.msra.mxu0 %v37_v1  ;;  %v157_v6 = vld [vmem:[%s592_s3 + $0x38] sm:$0xff]  ;;  %v156_v7 = vld [vmem:[%s592_s3 + $0x30] sm:$0xff]  ;;  %v155_v8 = vld [vmem:[%s592_s3 + $0x28] sm:$0xff]  ;;  %s345_s22 = sshll.u32 %s453_s21, 4  ;;  %s346_s22 = int_to_ptr.vmem [resolvable:$true] %s345_s22 }
   0x6   :  { %386 = vmatprep.subr.mxu0 %v36_v3  ;;  %393 = vmatprep.subr.mxu1 %v157_v6  ;;  %v154_v9 = vld [vmem:[%s592_s3 + $0x20] sm:$0xff]  ;;  %v153_v10 = vld [vmem:[%s592_s3 + $0x18] sm:$0xff]  ;;  %v152_v11 = vld [vmem:[%s592_s3 + $0x10] sm:$0xff]  ;;  %s431_s23 = scalar_lea.vmem %s346_s22, 256  ;;  %p436_p1 = scmp.lt.s32.totalorder %s346_s22, %s346_s22 }
   0x7   :  { %387 = vmatpush3.msra.mxu0 %v36_v3  ;;  %394 = vmatpush3.msra.mxu1 %v157_v6  ;;  %v151_v12 = vld [vmem:[%s592_s3 + $0x8] sm:$0xff]  ;;  %v150_v13 = vld [vmem:[%s592_s3] sm:$0xff]  ;;  %p432_p0 = scmp.ne.s32.totalorder %s346_s22, %s431_s23  ;;  %p437_p2 = scmp.lt.s32.totalorder %s431_s23, %s431_s23 }
   0x8   :  { %388 = vmatprep.subr.mxu0 %v35_v4  ;;  %395 = vmatprep.subr.mxu1 %v156_v7  ;;  %v356_v14 = vld [vmem:[%s591_s2] ss:$0 sm:$0xff] }
   0x9   :  { %389 = vmatpush3.msra.mxu0 %v35_v4  ;;  %396 = vmatpush3.msra.mxu1 %v156_v7  ;;  %v359_v40 = vld [vmem:[%s593_s4] ss:$0 sm:$0xff]  ;;  %p438_p3 = por %p437_p2, %p436_p1 }
   0xa   :  { %391 = vmatmul.mubr.msk.f32.vlgmr.msra.gmra.mxu0 %vm46_vm0, %v528_v5  ;;  %397 = vmatprep.subr.mxu1 %v155_v8  ;;  %v362_v63 = vld [vmem:[%s594_s5] ss:$0 sm:$0xff] }
   0xb   :  { %398 = vmatpush3.msra.mxu1 %v155_v8  ;;  %v363_v1 = vld [vmem:[%s595_s6] ss:$0 sm:$0xff]  ;;  %p439_p4 = pnand %p438_p3, %p432_p0 }
   0xc   :  { %399 = vmatprep.subr.mxu1 %v154_v9 }
   0xd   :  { %400 = vmatpush3.msra.mxu1 %v154_v9 }
   0xe   :  { %401 = vmatprep.subr.mxu1 %v153_v10 }
   0xf   :  { %402 = vmatpush3.msra.mxu1 %v153_v10 }
  0x10   :  { %403 = vmatprep.subr.mxu1 %v152_v11 }
  0x11   :  { %404 = vmatpush3.msra.mxu1 %v152_v11 }
  0x12   :  { %405 = vmatprep.subr.mxu1 %v151_v12 }
  0x13   :  { %406 = vmatpush3.msra.mxu1 %v151_v12 }
  0x14   :  { %407 = vmatprep.subr.mxu1 %v150_v13 }
  0x15   :  { %408 = vmatpush3.msra.mxu1 %v150_v13 }
  0xca   :  { %v392_v15 = vpop.f32.mrf.mxu0 }
  0xcb   :  { %v125_v16 = vadd.f32 %v392_v15, %v356_v14 }
  0xcc   :  { %v119_v17 = vpop.f32.mrf.mxu0 }
  0xcd   :  { %v129_v18 = vmin.f32 %v125_v16, 20.0  ;;  %v120_v19 = vadd.f32 %v356_v14, %v119_v17  ;;  %vm147_vm3 = vcmp.gt.f32.partialorder %v125_v16, 20.0 }
  0xcf   :  { %v132_v20 = vmul.f32 1.442695, %v129_v18  ;;  %v128_v21 = vmin.f32 %v120_v19, 20.0  ;;  %vm146_vm2 = vcmp.gt.f32.partialorder %v120_v19, 20.0 }
  0xd1   :  { %415 = vpow2.f32 %v132_v20  ;;  %v130_v22 = vmul.f32 1.442695, %v128_v21 }
  0xd3   :  { %417 = vpow2.f32 %v130_v22 }
  0xde   :  { %v416_v23 = vpop.eup %415 }
  0xdf   :  { %v135_v24 = vadd.f32 2.0, %v416_v23 }
  0xe0   :  { %v418_v25 = vpop.eup %417 }
  0xe1   :  { %v137_v26 = vmul.f32 %v416_v23, %v135_v24  ;;  %v134_v27 = vadd.f32 2.0, %v418_v25 }
  0xe3   :  { %v141_v28 = vadd.f32 2.0, %v137_v26  ;;  %v136_v29 = vmul.f32 %v418_v25, %v134_v27  ;;  %v139_v32 = vmul.f32 %v137_v26, %v125_v16 }
  0xe5   :  { %419 = vrcp.f32 %v141_v28  ;;  %v140_v30 = vadd.f32 2.0, %v136_v29  ;;  %v138_v33 = vmul.f32 %v136_v29, %v120_v19  ;;  %v364_v29 = vld [vmem:[%s596_s7] ss:$0 sm:$0xff] }
  0xe7   :  { %421 = vrcp.f32 %v140_v30 }
  0xf2   :  { %v420_v31 = vpop.eup %419 }
  0xf3   :  { %v145_v35 = vmul.f32 %v420_v31, %v139_v32  ;;  %v365_v31 = vld [vmem:[%s597_s8] ss:$0 sm:$0xff] }
  0xf4   :  { %v422_v34 = vpop.eup %421 }
  0xf5   :  { %v144_v36 = vmul.f32 %v422_v34, %v138_v33  ;;  %v149_v38 = vsel %vm147_vm3, %v125_v16, %v145_v35 }
  0xf7   :  { %v148_v37 = vsel %vm146_vm2, %v120_v19, %v144_v36 }
  0xf8   :  { %409 = vmatprep.mubr.msk.f32.mxu1 %vm165_vm1, %v148_v37 }
  0xf9   :  { %410 = vmatmul.mubr.msk.f32.vlgmr.msra.gmra.mxu1 %vm165_vm1, %v149_v38 }
 0x1b9   :  { %v411_v39 = vpop.f32.mrf.mxu1 }
 0x1ba   :  { %v244_v43 = vadd.f32 %v411_v39, %v359_v40 }
 0x1bb   :  { %v238_v41 = vpop.f32.mrf.mxu1 }
 0x1bc   :  { %v239_v42 = vadd.f32 %v359_v40, %v238_v41  ;;  %v252_v45 = vsel %vm46_vm0, %v244_v43, 0.0 }
 0x1be   :  { %v249_v44 = vsel %vm46_vm0, %v239_v42, 0.0 }
 0x1bf   :  { %250 = vadd.xlane.f32.xlu0 %v249_v44 }
 0x1c3   :  { %253 = vadd.xlane.f32.xlu0 %v252_v45 }
 0x248   :  { %v251_v46 = vpop.xlane.xlu0 %250 }
 0x249   :  { %v256_v47 = vmul.f32 0.03125, %v251_v46 }
 0x24b   :  { %v258_v48 = vsub.f32 %v239_v42, %v256_v47 }
 0x24c   :  { %v254_v49 = vpop.xlane.xlu0 %253 }
 0x24d   :  { %v257_v50 = vmul.f32 0.03125, %v254_v49  ;;  %v260_v51 = vmul.f32 %v258_v48, %v258_v48 }
 0x24f   :  { %v259_v52 = vsub.f32 %v244_v43, %v257_v50  ;;  %v262_v53 = vsel %vm46_vm0, %v260_v51, 0.0 }
 0x250   :  { %263 = vadd.xlane.f32.xlu1 %v262_v53 }
 0x251   :  { %v261_v54 = vmul.f32 %v259_v52, %v259_v52 }
 0x253   :  { %v265_v55 = vsel %vm46_vm0, %v261_v54, 0.0 }
 0x254   :  { %266 = vadd.xlane.f32.xlu1 %v265_v55 }
 0x2d9   :  { %v264_v56 = vpop.xlane.xlu1 %263 }
 0x2da   :  { %v268_v57 = vmul.f32 0.03125, %v264_v56 }
 0x2dc   :  { %v270_v58 = vadd.f32 1e-05, %v268_v57 }
 0x2dd   :  { %v267_v59 = vpop.xlane.xlu1 %266 }
 0x2de   :  { %423 = vrsqrt.f32 %v270_v58  ;;  %v269_v60 = vmul.f32 0.03125, %v267_v59 }
 0x2e0   :  { %v271_v61 = vadd.f32 1e-05, %v269_v60 }
 0x2e2   :  { %425 = vrsqrt.f32 %v271_v61 }
 0x2eb   :  { %v424_v62 = vpop.eup %423 }
 0x2ec   :  { %v274_v0 = vmul.f32 %v424_v62, %v258_v48 }
 0x2ee   :  { %v282_v3 = vmul.f32 %v362_v63, %v274_v0 }
 0x2ef   :  { %v426_v4 = vpop.eup %425 }
 0x2f0   :  { %v290_v6 = vadd.f32 %v363_v1, %v282_v3  ;;  %v275_v7 = vmul.f32 %v426_v4, %v259_v52 }
 0x2f2   :  { %v292_v8 = vadd.f32 %v290_v6, %v515_v2  ;;  %v283_v9 = vmul.f32 %v362_v63, %v275_v7 }
 0x2f4   :  { %v296_v10 = vsel %vm46_vm0, %v292_v8, 0.0  ;;  %v291_v11 = vadd.f32 %v363_v1, %v283_v9 }
 0x2f5   :  { %297 = vadd.xlane.f32.xlu0 %v296_v10 }
 0x2f6   :  { %v293_v12 = vadd.f32 %v291_v11, %v528_v5 }
 0x2f8   :  { %v299_v13 = vsel %vm46_vm0, %v293_v12, 0.0 }
 0x2f9   :  { %300 = vadd.xlane.f32.xlu1 %v299_v13 }
 0x37e   :  { %v298_v14 = vpop.xlane.xlu0 %297 }
 0x37f   :  { %v302_v15 = vmul.f32 0.03125, %v298_v14 }
 0x381   :  { %v304_v16 = vsub.f32 %v292_v8, %v302_v15 }
 0x382   :  { %v301_v17 = vpop.xlane.xlu1 %300 }
 0x383   :  { %v303_v18 = vmul.f32 0.03125, %v301_v17  ;;  %v306_v19 = vmul.f32 %v304_v16, %v304_v16 }
 0x385   :  { %v305_v20 = vsub.f32 %v293_v12, %v303_v18  ;;  %v308_v21 = vsel %vm46_vm0, %v306_v19, 0.0 }
 0x386   :  { %309 = vadd.xlane.f32.xlu0 %v308_v21 }
 0x387   :  { %v307_v2 = vmul.f32 %v305_v20, %v305_v20 }
 0x389   :  { %v311_v22 = vsel %vm46_vm0, %v307_v2, 0.0 }
 0x38a   :  { %312 = vadd.xlane.f32.xlu1 %v311_v22 }
 0x40f   :  { %v310_v23 = vpop.xlane.xlu0 %309 }
 0x410   :  { %v314_v24 = vmul.f32 0.03125, %v310_v23 }
 0x412   :  { %v316_v5 = vadd.f32 1e-05, %v314_v24 }
 0x413   :  { %v313_v25 = vpop.xlane.xlu1 %312 }
 0x414   :  { %427 = vrsqrt.f32 %v316_v5  ;;  %v315_v26 = vmul.f32 0.03125, %v313_v25 }
 0x416   :  { %v317_v27 = vadd.f32 1e-05, %v315_v26 }
 0x418   :  { %429 = vrsqrt.f32 %v317_v27 }
 0x421   :  { %v428_v28 = vpop.eup %427 }
 0x422   :  { %v320_v30 = vmul.f32 %v428_v28, %v304_v16 }
 0x424   :  { %v328_v32 = vmul.f32 %v364_v29, %v320_v30 }
 0x425   :  { %v430_v33 = vpop.eup %429 }
 0x426   :  { %v321_v34 = vmul.f32 %v430_v33, %v305_v20  ;;  %v336_v35 = vadd.f32 %v365_v31, %v328_v32 }
 0x428   :  { %v329_v36 = vmul.f32 %v364_v29, %v321_v34  ;;  %338 = vst.msk [vmem:[#allocation2] sm:$0xff] %vm46_vm0, %v336_v35 }
 0x42a   :  { %v337_v37 = vadd.f32 %v365_v31, %v329_v36 }
 0x42c   :  { %339 = vst.msk [vmem:[#allocation2 + $0x8] sm:$0xff] %vm46_vm0, %v337_v37 }
 0x42d   :  { %442 = shalt.err (!%p439_p4)
}
 0x42e   :  { %s454_s7 = smov 128   ;;  %s455_s8 = smov 8  }
 0x42f   :  { %351 = dma.vmem_to_hbm [thread:$0]  %s346_s22, 256, %s598_s9, [#allocation3], %s454_s7, %s454_s7, %s455_s8  }
 0x430   :  { %451 = dma.done.wait [#allocation3], 256  }
 0x431   :  { %452 = vsyncadd [#allocation3], 4294967040 }
 0x432   :  { %355 = vsyncpa [#allocation3], 1 }

// kernel: encoder_forward.5
= control target key start
LH: loop header
LB: loop body
LE: loop exit
PB: predicated region body
PF: predicated region fallthrough
CT: control target
= control target key end

     0   :  { %v1904_v3 = vmov 0.0   ;;  %vm38_vm0 = vcmask 64512   ;;  %vm1905_vm1 = vmmov 0   ;;  %s2337_s2 = inlined_call_operand.vmem [shape: f32[8,8,8], index: 2, kind: input, shape index: {}]   ;;  %s2338_s3 = inlined_call_operand.vmem [shape: f32[8,8,8], index: 3, kind: output, shape index: {}]   ;;  %s2339_s1 = inlined_call_operand.vmem [shape: f32[8,8,8], index: 1, kind: input, shape index: {}]   ;;  %s2340_s0 = inlined_call_operand.vmem [shape: f32[8,8,8], index: 0, kind: input, shape index: {}]  }
   0x1   :  { %v1929_v0 = vld [vmem:[%s2337_s2] sm:$0xff]  ;;  %v1934_v1 = vld [vmem:[%s2337_s2 + $0x8] sm:$0xff]  ;;  %v1939_v2 = vld [vmem:[%s2337_s2 + $0x10] sm:$0xff]  ;;  %1550 = vmatprep.subr.mxu0 %v1904_v3  ;;  %1552 = vmatprep.mubr.msk.f32.mxu0 %vm1905_vm1, %v1904_v3 }
   0x2   :  { %v1947_v4 = vld [vmem:[%s2337_s2 + $0x18] sm:$0xff]  ;;  %v1952_v5 = vld [vmem:[%s2337_s2 + $0x20] sm:$0xff]  ;;  %v1957_v6 = vld [vmem:[%s2337_s2 + $0x28] sm:$0xff]  ;;  %1555 = vmatprep.subr.mxu1 %v1904_v3  ;;  %1557 = vmatprep.mubr.msk.f32.mxu1 %vm1905_vm1, %v1904_v3 }
   0x3   :  { %v1965_v7 = vld [vmem:[%s2337_s2 + $0x30] sm:$0xff]  ;;  %v1970_v8 = vld [vmem:[%s2337_s2 + $0x38] sm:$0xff]  ;;  %v22_v9 = vld [vmem:[%s2339_s1] sm:$0xff] }
   0x4   :  { %1551 = vmatpush3.xpose.msk.msra.mxu0 %vm38_vm0, %v22_v9  ;;  %v14_v10 = vld [vmem:[%s2340_s0] sm:$0xff]  ;;  %v23_v11 = vld [vmem:[%s2339_s1 + $0x8] sm:$0xff]  ;;  %v24_v12 = vld [vmem:[%s2339_s1 + $0x10] sm:$0xff] }
   0x5   :  { %1556 = vmatpush3.xpose.msk.msra.mxu1 %vm38_vm0, %v23_v11  ;;  %1560 = vmatprep.subr.mxu0 %v1904_v3  ;;  %v15_v13 = vld [vmem:[%s2340_s0 + $0x8] sm:$0xff]  ;;  %v25_v14 = vld [vmem:[%s2339_s1 + $0x18] sm:$0xff]  ;;  %v16_v15 = vld [vmem:[%s2340_s0 + $0x10] sm:$0xff] }
   0x6   :  { %1565 = vmatprep.subr.mxu1 %v1904_v3  ;;  %v26_v16 = vld [vmem:[%s2339_s1 + $0x20] sm:$0xff]  ;;  %v17_v17 = vld [vmem:[%s2340_s0 + $0x18] sm:$0xff]  ;;  %v27_v18 = vld [vmem:[%s2339_s1 + $0x28] sm:$0xff] }
   0x7   :  { %1553 = vmatmul.mubr.msk.f32.vlgmr.msra.gmra.mxu0 %vm38_vm0, %v14_v10  ;;  %v18_v19 = vld [vmem:[%s2340_s0 + $0x20] sm:$0xff]  ;;  %v28_v20 = vld [vmem:[%s2339_s1 + $0x30] sm:$0xff]  ;;  %v19_v21 = vld [vmem:[%s2340_s0 + $0x28] sm:$0xff] }
   0x8   :  { %1561 = vmatpush3.xpose.msk.msra.mxu0 %vm38_vm0, %v24_v12  ;;  %1558 = vmatmul.mubr.msk.f32.vlgmr.msra.gmra.mxu1 %vm38_vm0, %v15_v13  ;;  %v29_v22 = vld [vmem:[%s2339_s1 + $0x38] sm:$0xff]  ;;  %v20_v23 = vld [vmem:[%s2340_s0 + $0x30] sm:$0xff] }
   0x9   :  { %1562 = vmatprep.mubr.msk.f32.mxu0 %vm1905_vm1, %v1904_v3  ;;  %1566 = vmatpush3.xpose.msk.msra.mxu1 %vm38_vm0, %v25_v14  ;;  %v21_v24 = vld [vmem:[%s2340_s0 + $0x38] sm:$0xff]  ;;  %s2110_s0 = smov 0  }
   0xa   :  { %1570 = vmatprep.subr.mxu0 %v1904_v3  ;;  %1567 = vmatprep.mubr.msk.f32.mxu1 %vm1905_vm1, %v1904_v3 }
   0xb   :  { %1563 = vmatmul.mubr.msk.f32.vlgmr.msra.gmra.mxu0 %vm38_vm0, %v16_v15  ;;  %1575 = vmatprep.subr.mxu1 %v1904_v3 }
   0xc   :  { %1571 = vmatpush3.xpose.msk.msra.mxu0 %vm38_vm0, %v26_v16  ;;  %1568 = vmatmul.mubr.msk.f32.vlgmr.msra.gmra.mxu1 %vm38_vm0, %v17_v17 }
   0xd   :  { %1572 = vmatprep.mubr.msk.f32.mxu0 %vm1905_vm1, %v1904_v3  ;;  %1576 = vmatpush3.xpose.msk.msra.mxu1 %vm38_vm0, %v27_v18 }
   0xe   :  { %1580 = vmatprep.subr.mxu0 %v1904_v3  ;;  %1577 = vmatprep.mubr.msk.f32.mxu1 %vm1905_vm1, %v1904_v3 }
   0xf   :  { %1573 = vmatmul.mubr.msk.f32.vlgmr.msra.gmra.mxu0 %vm38_vm0, %v18_v19  ;;  %1585 = vmatprep.subr.mxu1 %v1904_v3 }
  0x10   :  { %1581 = vmatpush3.xpose.msk.msra.mxu0 %vm38_vm0, %v28_v20  ;;  %1578 = vmatmul.mubr.msk.f32.vlgmr.msra.gmra.mxu1 %vm38_vm0, %v19_v21 }
  0x11   :  { %1582 = vmatprep.mubr.msk.f32.mxu0 %vm1905_vm1, %v1904_v3  ;;  %1586 = vmatpush3.xpose.msk.msra.mxu1 %vm38_vm0, %v29_v22 }
  0x12   :  { %1587 = vmatprep.mubr.msk.f32.mxu1 %vm1905_vm1, %v1904_v3 }
  0x13   :  { %1583 = vmatmul.mubr.msk.f32.vlgmr.msra.gmra.mxu0 %vm38_vm0, %v20_v23 }
  0x14   :  { %1588 = vmatmul.mubr.msk.f32.vlgmr.msra.gmra.mxu1 %vm38_vm0, %v21_v24 }
  0xc7   :  { %v111_v25 = vpop.f32.mrf.mxu0 }
  0xc8   :  { %v647_v26 = vmul.f32 0.35355338, %v111_v25  ;;  %v187_v27 = vpop.f32.mrf.mxu1 }
  0xc9   :  { %v1554_v28 = vpop.f32.mrf.mxu0  ;;  %v648_v29 = vmul.f32 0.35355338, %v187_v27  ;;  %v2080_v27 = vmov 0.0  }
  0xca   :  { %v655_v30 = vsel %vm38_vm0, %v647_v26, -inf  ;;  %v1559_v31 = vpop.f32.mrf.mxu1  ;;  %v2082_v28 = vmov 0.0  }
  0xcb   :  { %656 = vmax.xlane.f32.xlu0 %v655_v30  ;;  %v263_v32 = vpop.f32.mrf.mxu0  ;;  %v658_v35 = vsel %vm38_vm0, %v648_v29, -inf  ;;  %v2086_v30 = vmov 0.0   ;;  %v2088_v31 = vmov 0.0  }
  0xcc   :  { %v649_v33 = vmul.f32 0.35355338, %v263_v32  ;;  %v339_v34 = vpop.f32.mrf.mxu1  ;;  %v2090_v32 = vmov 0.0  }
  0xcd   :  { %v1564_v36 = vpop.f32.mrf.mxu0  ;;  %v650_v37 = vmul.f32 0.35355338, %v339_v34  ;;  %v2094_v34 = vmov -1.0  }
  0xce   :  { %v661_v38 = vsel %vm38_vm0, %v649_v33, -inf  ;;  %v1569_v39 = vpop.f32.mrf.mxu1  ;;  %v2098_v36 = vmov -1.0  }
  0xcf   :  { %659 = vmax.xlane.f32.xlu0 %v658_v35  ;;  %662 = vmax.xlane.f32.xlu1 %v661_v38  ;;  %v415_v40 = vpop.f32.mrf.mxu0  ;;  %v664_v43 = vsel %vm38_vm0, %v650_v37, -inf  ;;  %v2096_v35 = vmov -1.0   ;;  %v2102_v38 = vmov -1.0   ;;  %v2104_v39 = vmov -1.0  }
  0xd0   :  { %v651_v41 = vmul.f32 0.35355338, %v415_v40  ;;  %v491_v42 = vpop.f32.mrf.mxu1  ;;  %v2106_v40 = vmov -1.0  }
  0xd1   :  { %v1574_v44 = vpop.f32.mrf.mxu0  ;;  %v652_v45 = vmul.f32 0.35355338, %v491_v42 }
  0xd2   :  { %v667_v46 = vsel %vm38_vm0, %v651_v41, -inf  ;;  %v1579_v47 = vpop.f32.mrf.mxu1 }
  0xd3   :  { %665 = vmax.xlane.f32.xlu1 %v664_v43  ;;  %668 = vmax.xlane.f32.xlu0 %v667_v46  ;;  %v567_v48 = vpop.f32.mrf.mxu0  ;;  %v670_v51 = vsel %vm38_vm0, %v652_v45, -inf }
  0xd4   :  { %v653_v49 = vmul.f32 0.35355338, %v567_v48  ;;  %v643_v50 = vpop.f32.mrf.mxu1 }
  0xd5   :  { %v654_v52 = vmul.f32 0.35355338, %v643_v50  ;;  %v1584_v53 = vpop.f32.mrf.mxu0 }
  0xd6   :  { %v673_v54 = vsel %vm38_vm0, %v653_v49, -inf  ;;  %v1589_v55 = vpop.f32.mrf.mxu1 }
  0xd7   :  { %671 = vmax.xlane.f32.xlu1 %v670_v51  ;;  %674 = vmax.xlane.f32.xlu0 %v673_v54  ;;  %v676_v56 = vsel %vm38_vm0, %v654_v52, -inf }
  0xdb   :  { %677 = vmax.xlane.f32.xlu1 %v676_v56 }
 0x154   :  { %v657_v57 = vpop.xlane.xlu0 %656 }
 0x155   :  { %v679_v58 = vsub.f32 %v647_v26, %v657_v57  ;;  %v2078_v26 = vmov 0.0  }
 0x157   :  { %v2062_v59 = vmul.f32 0.5, %v679_v58 }
 0x158   :  { %v660_v60 = vpop.xlane.xlu0 %659  ;;  %v663_v61 = vpop.xlane.xlu1 %662 }
 0x159   :  { %v680_v62 = vsub.f32 %v648_v29, %v660_v60  ;;  %v681_v63 = vsub.f32 %v649_v33, %v663_v61  ;;  %v2084_v29 = vmov 0.0   ;;  %v2092_v33 = vmov 0.0  }
 0x15b   :  { %v2064_v9 = vmul.f32 0.5, %v680_v62  ;;  %v2066_v10 = vmul.f32 0.5, %v681_v63 }
 0x15c   :  { %v666_v11 = vpop.xlane.xlu1 %665  ;;  %v669_v12 = vpop.xlane.xlu0 %668 }
 0x15d   :  { %v682_v13 = vsub.f32 %v650_v37, %v666_v11  ;;  %v683_v14 = vsub.f32 %v651_v41, %v669_v12  ;;  %v2100_v37 = vmov -1.0   ;;  %v2108_v41 = vmov -1.0  }
 0x15f   :  { %v2068_v15 = vmul.f32 0.5, %v682_v13  ;;  %v2070_v16 = vmul.f32 0.5, %v683_v14 }
 0x160   :  { %v672_v17 = vpop.xlane.xlu1 %671  ;;  %v675_v18 = vpop.xlane.xlu0 %674 }
 0x161   :  { %v684_v19 = vsub.f32 %v652_v45, %v672_v17  ;;  %v685_v20 = vsub.f32 %v653_v49, %v675_v18 }
 0x163   :  { %v2072_v21 = vmul.f32 0.5, %v684_v19  ;;  %v2074_v22 = vmul.f32 0.5, %v685_v20 }
 0x164   :  { %v678_v23 = vpop.xlane.xlu1 %677 }
 0x165   :  { %v686_v24 = vsub.f32 %v654_v52, %v678_v23 }
 0x167   :  { %v2076_v25 = vmul.f32 0.5, %v686_v24 }
 0x168 LB: > { %v717_v42 = vadd.f32 %v1866_v33, %v1898_v41  ;;  %v719_v43 = vadd.f32 %v1858_v31, %v1890_v39  ;;  %v718_v46 = vadd.f32 %v1862_v32, %v1894_v40  ;;  %v720_v50 = vadd.f32 %v1854_v30, %v1886_v38  ;;  %s700_s0 = sadd.s32 1, %s1902_s0   ;;  %s1902_s0 = sphi %s2110_s0, %s700_s0   ;;  %v1898_v41 = vphi %v2108_v41, %v2357_v41   ;;  %v1894_v40 = vphi %v2106_v40, %v2356_v40   ;;  %v1890_v39 = vphi %v2104_v39, %v2355_v39   ;;  %v1886_v38 = vphi %v2102_v38, %v2354_v38   ;;  %v1882_v37 = vphi %v2100_v37, %v2353_v37   ;;  %v1878_v36 = vphi %v2098_v36, %v2352_v36   ;;  %v1874_v35 = vphi %v2096_v35, %v2351_v35   ;;  %v1870_v34 = vphi %v2094_v34, %v2350_v34   ;;  %v1866_v33 = vphi %v2092_v33, %v2349_v33   ;;  %v1862_v32 = vphi %v2090_v32, %v2348_v32   ;;  %v1858_v31 = vphi %v2088_v31, %v2347_v31   ;;  %v1854_v30 = vphi %v2086_v30, %v2346_v30   ;;  %v1850_v29 = vphi %v2084_v29, %v2345_v29   ;;  %v1846_v28 = vphi %v2082_v28, %v2344_v28   ;;  %v1842_v27 = vphi %v2080_v27, %v2343_v27   ;;  %v1838_v26 = vphi %v2078_v26, %v2342_v26  }
 0x169   : > { %v721_v55 = vadd.f32 %v1850_v29, %v1882_v37  ;;  %v722_v62 = vadd.f32 %v1846_v28, %v1878_v36  ;;  %v723_v18 = vadd.f32 %v1842_v27, %v1874_v35  ;;  %p2217_p0 = scmp.ge.s32.totalorder %s700_s0, 30  }
 0x16a   : > { %v725_v44 = vmul.f32 0.5, %v717_v42  ;;  %v727_v45 = vmul.f32 0.5, %v719_v43  ;;  %v2171_v49 = vmul.f32 0.5, %v718_v46  ;;  %v728_v54 = vmul.f32 0.5, %v720_v50  ;;  %1590 = vmatprep.subr.mxu0 (%p2217_p0), %v1904_v3  ;;  %1595 = vmatprep.subr.mxu1 (%p2217_p0), %v1904_v3 }
 0x16b   : > { %v729_v61 = vmul.f32 0.5, %v721_v55  ;;  %v730_v17 = vmul.f32 0.5, %v722_v62  ;;  %v731_v42 = vmul.f32 0.5, %v723_v18  ;;  %v724_v46 = vadd.f32 %v1838_v26, %v1870_v34  ;;  %1591 = vmatpush3.msra.mxu0 (%p2217_p0), %v1929_v0  ;;  %1596 = vmatpush3.msra.mxu1 (%p2217_p0), %v1934_v1 }
 0x16c   : > { %v733_v47 = vsub.f32 %v2062_v59, %v725_v44  ;;  %v735_v48 = vsub.f32 %v2066_v10, %v727_v45  ;;  %v734_v53 = vsub.f32 %v2064_v9, %v2171_v49  ;;  %v736_v60 = vsub.f32 %v2068_v15, %v728_v54  ;;  %1592 = vmatprep.mubr.msk.f32.mxu0 (%p2217_p0), %vm1905_vm1, %v1904_v3 }
 0x16d   : > { %v737_v14 = vsub.f32 %v2070_v16, %v729_v61  ;;  %v738_v24 = vsub.f32 %v2072_v21, %v730_v17  ;;  %v739_v50 = vsub.f32 %v2074_v22, %v731_v42  ;;  %1597 = vmatprep.mubr.msk.f32.mxu1 (%p2217_p0), %vm1905_vm1, %v1904_v3  ;;  %1600 = vmatprep.subr.mxu0 (%p2217_p0), %v1904_v3 }
 0x16e   : > { %v741_v51 = vmax.f32 %v733_v47, 0.0  ;;  %v743_v52 = vmax.f32 %v735_v48, 0.0  ;;  %v742_v58 = vmax.f32 %v734_v53, 0.0  ;;  %v744_v13 = vmax.f32 %v736_v60, 0.0  ;;  %1605 = vmatprep.subr.mxu1 (%p2217_p0), %v1904_v3 }
 0x16f   : > { %v745_v23 = vmax.f32 %v737_v14, 0.0  ;;  %v746_v48 = vmax.f32 %v738_v24, 0.0  ;;  %v747_v55 = vmax.f32 %v739_v50, 0.0 }
 0x170   : > { %v749_v56 = vmul.f32 %v741_v51, %v741_v51  ;;  %v751_v57 = vmul.f32 %v743_v52, %v743_v52  ;;  %v750_v12 = vmul.f32 %v742_v58, %v742_v58  ;;  %v752_v20 = vmul.f32 %v744_v13, %v744_v13 }
 0x171   : > { %v753_v47 = vmul.f32 %v745_v23, %v745_v23  ;;  %v732_v51 = vmul.f32 0.5, %v724_v46  ;;  %v754_v53 = vmul.f32 %v746_v48, %v746_v48  ;;  %v755_v58 = vmul.f32 %v747_v55, %v747_v55 }
 0x172   : > { %v757_v63 = vsel %vm38_vm0, %v749_v56, 0.0  ;;  %v763_v11 = vsel %vm38_vm0, %v751_v57, 0.0  ;;  %v760_v19 = vsel %vm38_vm0, %v750_v12, 0.0  ;;  %v766_v43 = vsel %vm38_vm0, %v752_v20, 0.0 }
 0x173   : > { %758 = vadd.xlane.f32.xlu0 %v757_v63  ;;  %764 = vadd.xlane.f32.xlu1 %v763_v11  ;;  %v769_v52 = vsel %vm38_vm0, %v753_v47, 0.0  ;;  %v740_v56 = vsub.f32 %v2076_v25, %v732_v51  ;;  %v772_v57 = vsel %vm38_vm0, %v754_v53, 0.0  ;;  %v775_v62 = vsel %vm38_vm0, %v755_v58, 0.0 }
 0x175   : > { %v748_v60 = vmax.f32 %v740_v56, 0.0 }
 0x177   : > { %761 = vadd.xlane.f32.xlu0 %v760_v19  ;;  %767 = vadd.xlane.f32.xlu1 %v766_v43  ;;  %v756_v63 = vmul.f32 %v748_v60, %v748_v60 }
 0x179   : > { %v778_v11 = vsel %vm38_vm0, %v756_v63, 0.0 }
 0x17b   : > { %770 = vadd.xlane.f32.xlu0 %v769_v52  ;;  %773 = vadd.xlane.f32.xlu1 %v772_v57 }
 0x17f   : > { %776 = vadd.xlane.f32.xlu0 %v775_v62  ;;  %779 = vadd.xlane.f32.xlu1 %v778_v11 }
 0x1fc   : > { %v759_v12 = vpop.xlane.xlu0 %758  ;;  %v765_v13 = vpop.xlane.xlu1 %764 }
 0x1fd   : > { %vm781_vm2 = vcmp.ge.f32.partialorder %v759_v12, 1.0  ;;  %vm783_vm3 = vcmp.ge.f32.partialorder %v765_v13, 1.0 }
 0x1fe   : > { %v789_v14 = vsel %vm781_vm2, %v725_v44, %v1898_v41   ;;  %v797_v18 = vsel %vm781_vm2, %v1866_v33, %v725_v44   ;;  %v791_v19 = vsel %vm783_vm3, %v727_v45, %v1890_v39   ;;  %v799_v20 = vsel %vm783_vm3, %v1858_v31, %v727_v45  }
 0x1ff   : > { %v2355_v39 = vmov %v791_v19 }
 0x200   : > { %v762_v23 = vpop.xlane.xlu0 %761  ;;  %v768_v24 = vpop.xlane.xlu1 %767 }
 0x201   : > { %vm782_vm4 = vcmp.ge.f32.partialorder %v762_v23, 1.0  ;;  %vm784_vm5 = vcmp.ge.f32.partialorder %v768_v24, 1.0 }
 0x202   : > { %v790_v43 = vsel %vm782_vm4, %v2171_v49, %v1894_v40   ;;  %v798_v46 = vsel %vm782_vm4, %v1862_v32, %v2171_v49   ;;  %v792_v47 = vsel %vm784_vm5, %v728_v54, %v1886_v38   ;;  %v800_v48 = vsel %vm784_vm5, %v1854_v30, %v728_v54  }
 0x203   : > { %v2346_v30 = vmov %v800_v48  ;;  %v2354_v38 = vmov %v792_v47  ;;  %v2356_v40 = vmov %v790_v43 }
 0x204   : > { %v771_v41 = vpop.xlane.xlu0 %770  ;;  %v774_v33 = vpop.xlane.xlu1 %773 }
 0x205   : > { %vm785_vm6 = vcmp.ge.f32.partialorder %v771_v41, 1.0  ;;  %vm786_vm7 = vcmp.ge.f32.partialorder %v774_v33, 1.0  ;;  %v2349_v33 = vmov %v797_v18  ;;  %v2357_v41 = vmov %v789_v14 }
 0x206   : > { %v793_v44 = vsel %vm785_vm6, %v729_v61, %v1882_v37   ;;  %v801_v45 = vsel %vm785_vm6, %v1850_v29, %v729_v61   ;;  %v794_v50 = vsel %vm786_vm7, %v730_v17, %v1878_v36   ;;  %v802_v52 = vsel %vm786_vm7, %v1846_v28, %v730_v17  }
 0x207   : > { %v2344_v28 = vmov %v802_v52  ;;  %v2345_v29 = vmov %v801_v45  ;;  %v2352_v36 = vmov %v794_v50  ;;  %v2353_v37 = vmov %v793_v44  ;;  %699 = sbr.rel (!%p2217_p0) target bundleno = 360 (0x168), region = 39 }
 0x208   : > { %v777_v31 = vpop.xlane.xlu0 %776  ;;  %v780_v32 = vpop.xlane.xlu1 %779  ;;  %v805_v61 = vadd.f32 (%p2217_p0), %v797_v18, %v789_v14  ;;  %v806_v17 = vadd.f32 (%p2217_p0), %v798_v46, %v790_v43  ;;  %v809_v56 = vadd.f32 (%p2217_p0), %v801_v45, %v793_v44  ;;  %v810_v57 = vadd.f32 (%p2217_p0), %v802_v52, %v794_v50 }
 0x209   : > { %vm787_vm8 = vcmp.ge.f32.partialorder %v777_v31, 1.0  ;;  %vm788_vm9 = vcmp.ge.f32.partialorder %v780_v32, 1.0  ;;  %v2347_v31 = vmov %v799_v20  ;;  %v2348_v32 = vmov %v798_v46 }
 0x20a   : > { %v795_v49 = vsel %vm787_vm8, %v731_v42, %v1874_v35   ;;  %v803_v53 = vsel %vm787_vm8, %v1842_v27, %v731_v42   ;;  %v796_v54 = vsel %vm788_vm9, %v732_v51, %v1870_v34   ;;  %v804_v55 = vsel %vm788_vm9, %v1838_v26, %v732_v51  }
 0x20b   : > { %v2342_v26 = vmov %v804_v55  ;;  %v2343_v27 = vmov %v803_v53  ;;  %v2350_v34 = vmov %v796_v54  ;;  %v2351_v35 = vmov %v795_v49 }
 0x20c   :  { %v807_v42 = vadd.f32 %v799_v20, %v791_v19  ;;  %v808_v51 = vadd.f32 %v800_v48, %v792_v47  ;;  %v813_v26 = vmul.f32 0.5, %v805_v61  ;;  %v814_v27 = vmul.f32 0.5, %v806_v17 }
 0x20d   :  { %v811_v29 = vadd.f32 %v803_v53, %v795_v49  ;;  %v817_v30 = vmul.f32 0.5, %v809_v56  ;;  %v818_v1 = vmul.f32 0.5, %v810_v57  ;;  %v812_v34 = vadd.f32 %v804_v55, %v796_v54 }
 0x20e   :  { %v815_v28 = vmul.f32 0.5, %v807_v42  ;;  %v816_v0 = vmul.f32 0.5, %v808_v51  ;;  %v821_v35 = vsub.f32 %v2062_v59, %v813_v26  ;;  %v822_v36 = vsub.f32 %v2064_v9, %v814_v27 }
 0x20f   :  { %v825_v39 = vsub.f32 %v2070_v16, %v817_v30  ;;  %v826_v40 = vsub.f32 %v2072_v21, %v818_v1  ;;  %v819_v58 = vmul.f32 0.5, %v811_v29  ;;  %v820_v11 = vmul.f32 0.5, %v812_v34 }
 0x210   :  { %v823_v37 = vsub.f32 %v2066_v10, %v815_v28  ;;  %v824_v38 = vsub.f32 %v2068_v15, %v816_v0  ;;  %v829_v60 = vmax.f32 %v821_v35, 0.0  ;;  %v830_v62 = vmax.f32 %v822_v36, 0.0 }
 0x211   :  { %v833_v18 = vmax.f32 %v825_v39, 0.0  ;;  %v827_v59 = vsub.f32 %v2074_v22, %v819_v58  ;;  %v834_v15 = vmax.f32 %v826_v40, 0.0  ;;  %v828_v16 = vsub.f32 %v2076_v25, %v820_v11 }
 0x212   :  { %v831_v63 = vmax.f32 %v823_v37, 0.0  ;;  %v832_v12 = vmax.f32 %v824_v38, 0.0  ;;  %v837_v13 = vmul.f32 %v829_v60, %v829_v60  ;;  %v838_v14 = vmul.f32 %v830_v62, %v830_v62 }
 0x213   :  { %v841_v21 = vmul.f32 %v833_v18, %v833_v18  ;;  %v842_v22 = vmul.f32 %v834_v15, %v834_v15  ;;  %v835_v25 = vmax.f32 %v827_v59, 0.0 }
 0x214   :  { %1593 = vmatmul.mubr.msk.f32.vlgmr.msra.gmra.mxu0 %vm38_vm0, %v837_v13  ;;  %1598 = vmatmul.mubr.msk.f32.vlgmr.msra.gmra.mxu1 %vm38_vm0, %v838_v14  ;;  %v839_v9 = vmul.f32 %v831_v63, %v831_v63  ;;  %v840_v10 = vmul.f32 %v832_v12, %v832_v12 }
 0x215   :  { %1601 = vmatpush3.msra.mxu0 %v1939_v2  ;;  %1606 = vmatpush3.msra.mxu1 %v1947_v4  ;;  %v836_v2 = vmax.f32 %v828_v16, 0.0  ;;  %v843_v4 = vmul.f32 %v835_v25, %v835_v25 }
 0x216   :  { %1602 = vmatprep.mubr.msk.f32.mxu0 %vm1905_vm1, %v1904_v3  ;;  %1607 = vmatprep.mubr.msk.f32.mxu1 %vm1905_vm1, %v1904_v3 }
 0x217   :  { %1610 = vmatprep.subr.mxu0 %v1904_v3  ;;  %1615 = vmatprep.subr.mxu1 %v1904_v3  ;;  %v844_v19 = vmul.f32 %v836_v2, %v836_v2 }
 0x218   :  { %1603 = vmatmul.mubr.msk.f32.vlgmr.msra.gmra.mxu0 %vm38_vm0, %v839_v9  ;;  %1608 = vmatmul.mubr.msk.f32.vlgmr.msra.gmra.mxu1 %vm38_vm0, %v840_v10 }
 0x219   :  { %1611 = vmatpush3.msra.mxu0 %v1952_v5  ;;  %1616 = vmatpush3.msra.mxu1 %v1957_v6 }
 0x21a   :  { %1612 = vmatprep.mubr.msk.f32.mxu0 %vm1905_vm1, %v1904_v3  ;;  %1617 = vmatprep.mubr.msk.f32.mxu1 %vm1905_vm1, %v1904_v3 }
 0x21b   :  { %1620 = vmatprep.subr.mxu0 %v1904_v3  ;;  %1625 = vmatprep.subr.mxu1 %v1904_v3 }
 0x21c   :  { %1613 = vmatmul.mubr.msk.f32.vlgmr.msra.gmra.mxu0 %vm38_vm0, %v841_v21  ;;  %1618 = vmatmul.mubr.msk.f32.vlgmr.msra.gmra.mxu1 %vm38_vm0, %v842_v22 }
 0x21d   :  { %1621 = vmatpush3.msra.mxu0 %v1965_v7  ;;  %1626 = vmatpush3.msra.mxu1 %v1970_v8 }
 0x21e   :  { %1622 = vmatprep.mubr.msk.f32.mxu0 %vm1905_vm1, %v1904_v3  ;;  %1627 = vmatprep.mubr.msk.f32.mxu1 %vm1905_vm1, %v1904_v3 }
 0x220   :  { %1623 = vmatmul.mubr.msk.f32.vlgmr.msra.gmra.mxu0 %vm38_vm0, %v843_v4  ;;  %1628 = vmatmul.mubr.msk.f32.vlgmr.msra.gmra.mxu1 %vm38_vm0, %v844_v19 }
 0x2d4   :  { %v914_v5 = vpop.f32.mrf.mxu0  ;;  %v987_v6 = vpop.f32.mrf.mxu1 }
 0x2d5   :  { %1429 = vst.msk [vmem:[%s2338_s3] sm:$0xff] %vm38_vm0, %v914_v5  ;;  %1430 = vst.msk [vmem:[%s2338_s3 + $0x8] sm:$0xff] %vm38_vm0, %v987_v6 }
 0x2d6   :  { %v1594_v7 = vpop.f32.mrf.mxu0  ;;  %v1599_v8 = vpop.f32.mrf.mxu1 }
 0x2d8   :  { %v1060_v20 = vpop.f32.mrf.mxu0  ;;  %v1133_v3 = vpop.f32.mrf.mxu1 }
 0x2d9   :  { %1431 = vst.msk [vmem:[%s2338_s3 + $0x10] sm:$0xff] %vm38_vm0, %v1060_v20  ;;  %1432 = vst.msk [vmem:[%s2338_s3 + $0x18] sm:$0xff] %vm38_vm0, %v1133_v3 }
 0x2da   :  { %v1604_v23 = vpop.f32.mrf.mxu0  ;;  %v1609_v24 = vpop.f32.mrf.mxu1 }
 0x2dc   :  { %v1206_v43 = vpop.f32.mrf.mxu0  ;;  %v1279_v46 = vpop.f32.mrf.mxu1 }
 0x2dd   :  { %1433 = vst.msk [vmem:[%s2338_s3 + $0x20] sm:$0xff] %vm38_vm0, %v1206_v43  ;;  %1434 = vst.msk [vmem:[%s2338_s3 + $0x28] sm:$0xff] %vm38_vm0, %v1279_v46 }
 0x2de   :  { %v1614_v47 = vpop.f32.mrf.mxu0  ;;  %v1619_v48 = vpop.f32.mrf.mxu1 }
 0x2e0   :  { %v1352_v41 = vpop.f32.mrf.mxu0  ;;  %v1425_v33 = vpop.f32.mrf.mxu1 }
 0x2e1   :  { %1435 = vst.msk [vmem:[%s2338_s3 + $0x30] sm:$0xff] %vm38_vm0, %v1352_v41  ;;  %1436 = vst.msk [vmem:[%s2338_s3 + $0x38] sm:$0xff] %vm38_vm0, %v1425_v33 }
 0x2e2   :  { %v1624_v44 = vpop.f32.mrf.mxu0  ;;  %v1629_v45 = vpop.f32.mrf.mxu1 }

</bundles_post_ra>
